<compile_context>
chip_gen: v7x
topology: tpu7x:2x2x1
jax: 0.10.0
libtpu: 0.0.40
codegen_flags: <defaults>
</compile_context>

<pallas_src>
import functools
import math

import jax
import jax.numpy as jnp
import numpy as np
from jax import lax
from jax.experimental import pallas as pl
from jax.experimental.pallas import tpu as pltpu


def decoder_layer_kernel(
    dq_ref, dkv_ref, enc_ref, smask_ref, emask_ref,
    wq1_ref, wkv1_ref, wo1_ref, wq2_ref, wkv2_ref, wo2_ref,
    wff1_ref, wff2_ref,
    out_ref, self_attn_ref, enc_attn_ref,
    *, n_heads, d_k, d_v, eps):
    """One grid step == one (batch, query-tile) slab.

    MXU matmuls: bf16 operands, f32 accumulation.  Softmax / LayerNorm /
    residual adds: f32 (matches the fp32 PyTorch module up to bf16 rounding).
    """
    bf16 = jnp.bfloat16
    f32 = jnp.float32

    dq = dq_ref[0]                      # (TQ, D)   bf16  (queries + residual)
    dkv = dkv_ref[0]                    # (S_d, D)  bf16  (self-attn K/V source)
    enc = enc_ref[0]                    # (S_e, D)  bf16  (cross-attn K/V source)
    smask = smask_ref[0]                # (TQ, S_d) f32   additive (-1e9 masked)
    emask = emask_ref[0]                # (TQ, S_e) f32   additive (-1e9 masked)

    hk = n_heads * d_k

    def layer_norm(x):
        # nn.LayerNorm(d_model) created fresh in forward: gamma=1, beta=0.
        mu = jnp.mean(x, axis=-1, keepdims=True)
        var = jnp.mean((x - mu) ** 2, axis=-1, keepdims=True)
        return (x - mu) * lax.rsqrt(var + eps)

    def split_heads(x, base, d):
        # (S, ...) f32 -> (H, S, d) bf16; head h from columns
        # [base + h*d, base + (h+1)*d), same packing as torch .view(S, H, d).
        return jnp.stack(
            [x[:, base + h * d: base + (h + 1) * d] for h in range(n_heads)],
            axis=0).astype(bf16)

    def merge_heads(ctx):
        # (H, S_q, d_v) f32 -> (S_q, H*d_v) bf16: one lane-dense slab so the
        # output projection is a single MXU matmul with contraction H*d_v.
        return jnp.concatenate(
            [ctx[h] for h in range(n_heads)], axis=-1).astype(bf16)

    def attention(q_flat, kv_flat, add_mask, wo, attn_ref, residual_f32):
        # q_flat:  (S_q, H*d_k) f32 (already 1/sqrt(d_k)-scaled via wq)
        # kv_flat: (S_k, H*(d_k+d_v)) f32 fused K|V projection
        # wo: (H*d_v, D) bf16, residual_f32: (S_q, D) f32
        q = split_heads(q_flat, 0, d_k)                     # (H, S_q, d_k)
        k = split_heads(kv_flat, 0, d_k)                    # (H, S_k, d_k)
        v = split_heads(kv_flat, hk, d_v)                   # (H, S_k, d_v)
        scores = jnp.einsum('hqd,hkd->hqk', q, k,
                            preferred_element_type=f32)     # (H, S_q, S_k)
        scores = scores + add_mask[None]                    # additive mask
        scores = scores - jnp.max(scores, axis=-1, keepdims=True)
        e = jnp.exp(scores)
        probs = e * pl.reciprocal(jnp.sum(e, axis=-1, keepdims=True),
                                  approx=True)
        attn_ref[0] = probs.astype(attn_ref.dtype)          # one block write
        ctx = jnp.einsum('hqk,hkd->hqd', probs.astype(bf16), v,
                         preferred_element_type=f32)        # (H, S_q, d_v)
        out = jnp.dot(merge_heads(ctx), wo,
                      preferred_element_type=f32)           # (S_q, D)
        return layer_norm(out + residual_f32)

    # ---------------- self attention (queries = this tile, K/V = full dec) ---
    q1 = jnp.dot(dq, wq1_ref[...], preferred_element_type=f32)
    kv1 = jnp.dot(dkv, wkv1_ref[...], preferred_element_type=f32)
    x1 = attention(q1, kv1, smask, wo1_ref[...], self_attn_ref, dq.astype(f32))

    # ---------------- encoder-decoder attention (fused KV projection) --------
    q2 = jnp.dot(x1.astype(bf16), wq2_ref[...], preferred_element_type=f32)
    kv2 = jnp.dot(enc, wkv2_ref[...], preferred_element_type=f32)
    x2 = attention(q2, kv2, emask, wo2_ref[...], enc_attn_ref, x1)

    # ---------------- position-wise feed forward -----------------------------
    h = jnp.dot(x2.astype(bf16), wff1_ref[...], preferred_element_type=f32)
    h = jnp.maximum(h, 0.0)                                  # ReLU
    y = jnp.dot(h.astype(bf16), wff2_ref[...], preferred_element_type=f32)
    out_ref[0] = layer_norm(y + x2).astype(out_ref.dtype)


def decoder_layer(dec_inputs, enc_outputs, self_mask, enc_mask, params,
                  *, n_heads, d_k, d_v, block_q=128,
                  probs_dtype=jnp.float32):
    B, S_d, D = dec_inputs.shape
    _, S_e, _ = enc_outputs.shape
    bf16 = jnp.bfloat16
    f32 = jnp.float32

    tq = min(block_q, S_d)
    assert S_d % tq == 0 and (tq == S_d or tq % 8 == 0), \
        "query tile must divide S_d and be a multiple of 8"
    n_qt = S_d // tq

    # Host-side (free) weight packing: fold 1/sqrt(d_k) into wq, fuse K|V
    # projections, store bf16 (half the weight DMA); wo stays 2-D so the
    # output projection is one lane-dense matmul.
    inv_sqrt_dk = jnp.float32(1.0 / math.sqrt(d_k))
    wq1 = (params["wq1"] * inv_sqrt_dk).astype(bf16)
    wkv1 = jnp.concatenate([params["wk1"], params["wv1"]], axis=1).astype(bf16)
    wo1 = params["wo1"].astype(bf16)
    wq2 = (params["wq2"] * inv_sqrt_dk).astype(bf16)
    wkv2 = jnp.concatenate([params["wk2"], params["wv2"]], axis=1).astype(bf16)
    wo2 = params["wo2"].astype(bf16)
    wff1 = params["wff1"].astype(bf16)
    wff2 = params["wff2"].astype(bf16)

    # Additive masks (masked_fill(-1e9) -> one in-kernel VPU add).
    smask_add = self_mask.astype(f32) * jnp.float32(-1e9)
    emask_add = enc_mask.astype(f32) * jnp.float32(-1e9)

    # bf16 activation inputs: halves activation DMA; f32 only inside the
    # kernel for softmax / LayerNorm / residual math.
    dec_bf = dec_inputs.astype(bf16)
    enc_bf = enc_outputs.astype(bf16)

    def w_spec(shape):
        return pl.BlockSpec(shape, lambda b, q, _s=shape: (0,) * len(_s))

    kernel = functools.partial(
        decoder_layer_kernel, n_heads=n_heads, d_k=d_k, d_v=d_v, eps=1e-5)

    return pl.pallas_call(
        kernel,
        out_shape=(
            jax.ShapeDtypeStruct((B, S_d, D), jnp.float32),
            jax.ShapeDtypeStruct((B, n_heads, S_d, S_d), probs_dtype),
            jax.ShapeDtypeStruct((B, n_heads, S_d, S_e), probs_dtype),
        ),
        grid_spec=pltpu.PrefetchScalarGridSpec(
            num_scalar_prefetch=0,
            grid=(B, n_qt),
            in_specs=[
                pl.BlockSpec((1, tq, D), lambda b, q: (b, q, 0)),    # dec (Q tile)
                pl.BlockSpec((1, S_d, D), lambda b, q: (b, 0, 0)),   # dec (K/V, full)
                pl.BlockSpec((1, S_e, D), lambda b, q: (b, 0, 0)),   # enc (full)
                pl.BlockSpec((1, tq, S_d), lambda b, q: (b, q, 0)),  # self mask tile
                pl.BlockSpec((1, tq, S_e), lambda b, q: (b, q, 0)),  # enc mask tile
                w_spec(wq1.shape), w_spec(wkv1.shape), w_spec(wo1.shape),
                w_spec(wq2.shape), w_spec(wkv2.shape), w_spec(wo2.shape),
                w_spec(wff1.shape), w_spec(wff2.shape),
            ],
            out_specs=[
                pl.BlockSpec((1, tq, D), lambda b, q: (b, q, 0)),
                pl.BlockSpec((1, n_heads, tq, S_d), lambda b, q: (b, 0, q, 0)),
                pl.BlockSpec((1, n_heads, tq, S_e), lambda b, q: (b, 0, q, 0)),
            ],
        ),
        compiler_params=pltpu.CompilerParams(
            dimension_semantics=("parallel", "parallel"),
            vmem_limit_bytes=48 * 1024 * 1024),
    )(dec_bf, dec_bf, enc_bf, smask_add, emask_add,
      wq1, wkv1, wo1, wq2, wkv2, wo2, wff1, wff2)


# ---------------- pure-JAX reference (mirrors PyTorch fp32 semantics) --------
def reference(dec, enc, smask, emask, p, *, n_heads, d_k, d_v):
    def ln(x):
        mu = x.mean(-1, keepdims=True)
        var = ((x - mu) ** 2).mean(-1, keepdims=True)
        return (x - mu) / jnp.sqrt(var + 1e-5)

    def mha(q_in, kv_in, mask, wq, wk, wv, wo):
        B, Sq, D = q_in.shape
        Sk = kv_in.shape[1]
        Q = (q_in @ wq).reshape(B, Sq, n_heads, d_k).transpose(0, 2, 1, 3)
        K = (kv_in @ wk).reshape(B, Sk, n_heads, d_k).transpose(0, 2, 1, 3)
        V = (kv_in @ wv).reshape(B, Sk, n_heads, d_v).transpose(0, 2, 1, 3)
        scores = jnp.einsum("bhqd,bhkd->bhqk", Q, K) / math.sqrt(d_k)
        scores = jnp.where(mask[:, None] > 0.5, -1e9, scores)
        attn = jax.nn.softmax(scores, axis=-1)
        ctx = jnp.einsum("bhqk,bhkd->bhqd", attn, V)
        ctx = ctx.transpose(0, 2, 1, 3).reshape(B, Sq, n_heads * d_v)
        return ln(ctx @ wo + q_in), attn

    x, a1 = mha(dec, dec, smask, p["wq1"], p["wk1"], p["wv1"], p["wo1"])
    x, a2 = mha(x, enc, emask, p["wq2"], p["wk2"], p["wv2"], p["wo2"])
    y = jnp.maximum(x @ p["wff1"], 0.0) @ p["wff2"]
    return ln(y + x), a1, a2


if __name__ == "__main__":
    # Small, module-consistent shapes; S_d=16 with block_q=8 exercises the
    # query-tiled grid (grid = (B, 2)).
    B, S_d, S_e = 2, 16, 8
    d_model, d_k, d_v, n_heads, d_ff = 32, 8, 8, 4, 64

    key = jax.random.PRNGKey(0)
    ks = jax.random.split(key, 12)
    init = lambda k, shape: (0.05 * jax.random.normal(k, shape, jnp.float32))

    params = {
        "wq1": init(ks[0], (d_model, n_heads * d_k)),
        "wk1": init(ks[1], (d_model, n_heads * d_k)),
        "wv1": init(ks[2], (d_model, n_heads * d_v)),
        "wo1": init(ks[3], (n_heads * d_v, d_model)),
        "wq2": init(ks[4], (d_model, n_heads * d_k)),
        "wk2": init(ks[5], (d_model, n_heads * d_k)),
        "wv2": init(ks[6], (d_model, n_heads * d_v)),
        "wo2": init(ks[7], (n_heads * d_v, d_model)),
        "wff1": init(ks[8], (d_model, d_ff)),
        "wff2": init(ks[9], (d_ff, d_model)),
    }

    dec_inputs = jax.random.normal(ks[10], (B, S_d, d_model), jnp.float32)
    enc_outputs = jax.random.normal(ks[11], (B, S_e, d_model), jnp.float32)

    # Self-attn mask: causal (subsequent) mask; 1.0 == masked (like masked_fill).
    causal = jnp.triu(jnp.ones((S_d, S_d), jnp.float32), k=1)
    dec_self_attn_mask = jnp.broadcast_to(causal, (B, S_d, S_d))
    # Enc-dec mask: pad-mask masking the last 2 encoder positions.
    pad = (jnp.arange(S_e) >= S_e - 2).astype(jnp.float32)
    dec_enc_attn_mask = jnp.broadcast_to(pad[None, None, :], (B, S_d, S_e))

    out, self_attn, enc_attn = jax.block_until_ready(
        decoder_layer(dec_inputs, enc_outputs, dec_self_attn_mask,
                      dec_enc_attn_mask, params,
                      n_heads=n_heads, d_k=d_k, d_v=d_v, block_q=8))

    r_out, r_sa, r_ea = reference(dec_inputs, enc_outputs, dec_self_attn_mask,
                                  dec_enc_attn_mask, params,
                                  n_heads=n_heads, d_k=d_k, d_v=d_v)

    # bf16 activations/weights + approx reciprocal => loosened tolerance.
    np.testing.assert_allclose(np.asarray(out), np.asarray(r_out),
                               atol=2.5e-2, rtol=2.5e-2)
    np.testing.assert_allclose(np.asarray(self_attn), np.asarray(r_sa),
                               atol=2e-2, rtol=2e-2)
    np.testing.assert_allclose(np.asarray(enc_attn), np.asarray(r_ea),
                               atol=2e-2, rtol=2e-2)
    assert out.shape == (B, S_d, d_model)
    assert self_attn.shape == (B, n_heads, S_d, S_d)
    assert enc_attn.shape == (B, n_heads, S_d, S_e)
    print("KERNEL_OK")
</pallas_src>

<mosaic_0001>
module attributes {stable_mosaic.version = 11 : i64} {
  func.func @decoder_layer_kernel(%arg0: i32, %arg1: i32, %arg2: memref<1x8x32xbf16, #tpu.memory_space<vmem>>, %arg3: memref<1x16x32xbf16, #tpu.memory_space<vmem>>, %arg4: memref<1x8x32xbf16, #tpu.memory_space<vmem>>, %arg5: memref<1x8x16xf32, #tpu.memory_space<vmem>>, %arg6: memref<1x8x8xf32, #tpu.memory_space<vmem>>, %arg7: memref<32x32xbf16, #tpu.memory_space<vmem>>, %arg8: memref<32x64xbf16, #tpu.memory_space<vmem>>, %arg9: memref<32x32xbf16, #tpu.memory_space<vmem>>, %arg10: memref<32x32xbf16, #tpu.memory_space<vmem>>, %arg11: memref<32x64xbf16, #tpu.memory_space<vmem>>, %arg12: memref<32x32xbf16, #tpu.memory_space<vmem>>, %arg13: memref<32x64xbf16, #tpu.memory_space<vmem>>, %arg14: memref<64x32xbf16, #tpu.memory_space<vmem>>, %arg15: memref<1x8x32xf32, #tpu.memory_space<vmem>>, %arg16: memref<1x4x8x16xf32, #tpu.memory_space<vmem>>, %arg17: memref<1x4x8x8xf32, #tpu.memory_space<vmem>>) attributes {dimension_semantics = [#tpu.dimension_semantics<parallel>, #tpu.dimension_semantics<parallel>], iteration_bounds = array<i64: 2, 2>, scalar_prefetch = 0 : i64, scratch_operands = 0 : i64, tpu.core_type = #tpu.core_type<tc>, window_params = [{transform_indices = @transform_0, window_bounds = array<i64: 1, 8, 32>}, {transform_indices = @transform_1, window_bounds = array<i64: 1, 16, 32>}, {transform_indices = @transform_2, window_bounds = array<i64: 1, 8, 32>}, {transform_indices = @transform_3, window_bounds = array<i64: 1, 8, 16>}, {transform_indices = @transform_4, window_bounds = array<i64: 1, 8, 8>}, {pipeline_mode = #tpu.pipeline_mode<synchronous>, transform_indices = @transform_5, window_bounds = array<i64: 32, 32>}, {pipeline_mode = #tpu.pipeline_mode<synchronous>, transform_indices = @transform_6, window_bounds = array<i64: 32, 64>}, {pipeline_mode = #tpu.pipeline_mode<synchronous>, transform_indices = @transform_7, window_bounds = array<i64: 32, 32>}, {pipeline_mode = #tpu.pipeline_mode<synchronous>, transform_indices = @transform_8, window_bounds = array<i64: 32, 32>}, {pipeline_mode = #tpu.pipeline_mode<synchronous>, transform_indices = @transform_9, window_bounds = array<i64: 32, 64>}, {pipeline_mode = #tpu.pipeline_mode<synchronous>, transform_indices = @transform_10, window_bounds = array<i64: 32, 32>}, {pipeline_mode = #tpu.pipeline_mode<synchronous>, transform_indices = @transform_11, window_bounds = array<i64: 32, 64>}, {pipeline_mode = #tpu.pipeline_mode<synchronous>, transform_indices = @transform_12, window_bounds = array<i64: 64, 32>}, {transform_indices = @transform_13, window_bounds = array<i64: 1, 8, 32>}, {transform_indices = @transform_14, window_bounds = array<i64: 1, 4, 8, 16>}, {transform_indices = @transform_15, window_bounds = array<i64: 1, 4, 8, 8>}]} {
    %c0 = arith.constant 0 : index
    %c0_0 = arith.constant 0 : index
    %c0_1 = arith.constant 0 : index
    %0 = vector.load %arg2[%c0, %c0_0, %c0_1] : memref<1x8x32xbf16, #tpu.memory_space<vmem>>, vector<1x8x32xbf16>
    %1 = vector.shape_cast %0 : vector<1x8x32xbf16> to vector<8x32xbf16>
    %c0_2 = arith.constant 0 : index
    %c0_3 = arith.constant 0 : index
    %c0_4 = arith.constant 0 : index
    %2 = vector.load %arg3[%c0_2, %c0_3, %c0_4] : memref<1x16x32xbf16, #tpu.memory_space<vmem>>, vector<1x16x32xbf16>
    %3 = vector.shape_cast %2 : vector<1x16x32xbf16> to vector<16x32xbf16>
    %c0_5 = arith.constant 0 : index
    %c0_6 = arith.constant 0 : index
    %c0_7 = arith.constant 0 : index
    %4 = vector.load %arg4[%c0_5, %c0_6, %c0_7] : memref<1x8x32xbf16, #tpu.memory_space<vmem>>, vector<1x8x32xbf16>
    %5 = vector.shape_cast %4 : vector<1x8x32xbf16> to vector<8x32xbf16>
    %c0_8 = arith.constant 0 : index
    %c0_9 = arith.constant 0 : index
    %c0_10 = arith.constant 0 : index
    %6 = vector.load %arg5[%c0_8, %c0_9, %c0_10] : memref<1x8x16xf32, #tpu.memory_space<vmem>>, vector<1x8x16xf32>
    %7 = vector.shape_cast %6 : vector<1x8x16xf32> to vector<8x16xf32>
    %c0_11 = arith.constant 0 : index
    %c0_12 = arith.constant 0 : index
    %c0_13 = arith.constant 0 : index
    %8 = vector.load %arg6[%c0_11, %c0_12, %c0_13] : memref<1x8x8xf32, #tpu.memory_space<vmem>>, vector<1x8x8xf32>
    %9 = vector.shape_cast %8 : vector<1x8x8xf32> to vector<8x8xf32>
    %c0_14 = arith.constant 0 : index
    %c0_15 = arith.constant 0 : index
    %10 = vector.load %arg7[%c0_14, %c0_15] : memref<32x32xbf16, #tpu.memory_space<vmem>>, vector<32x32xbf16>
    %cst = arith.constant dense<0.000000e+00> : vector<8x32xf32>
    %11 = tpu.matmul %1, %10, %cst {dimension_numbers = #tpu.dot_dimension_numbers<[1], [0], [0], [1], [0, 0, 1, 1], [], []>} : vector<8x32xbf16>, vector<32x32xbf16>, vector<8x32xf32> -> vector<8x32xf32>
    %c0_16 = arith.constant 0 : index
    %c0_17 = arith.constant 0 : index
    %12 = vector.load %arg8[%c0_16, %c0_17] : memref<32x64xbf16, #tpu.memory_space<vmem>>, vector<32x64xbf16>
    %cst_18 = arith.constant dense<0.000000e+00> : vector<16x64xf32>
    %13 = tpu.matmul %3, %12, %cst_18 {dimension_numbers = #tpu.dot_dimension_numbers<[1], [0], [0], [1], [0, 0, 1, 1], [], []>} : vector<16x32xbf16>, vector<32x64xbf16>, vector<16x64xf32> -> vector<16x64xf32>
    %c0_19 = arith.constant 0 : index
    %c0_20 = arith.constant 0 : index
    %14 = vector.load %arg9[%c0_19, %c0_20] : memref<32x32xbf16, #tpu.memory_space<vmem>>, vector<32x32xbf16>
    %15 = arith.extf %1 : vector<8x32xbf16> to vector<8x32xf32>
    %16 = vector.extract_strided_slice %11 {offsets = [0, 0], sizes = [8, 8], strides = [1, 1]} : vector<8x32xf32> to vector<8x8xf32>
    %17 = vector.extract_strided_slice %11 {offsets = [0, 8], sizes = [8, 8], strides = [1, 1]} : vector<8x32xf32> to vector<8x8xf32>
    %18 = vector.extract_strided_slice %11 {offsets = [0, 16], sizes = [8, 8], strides = [1, 1]} : vector<8x32xf32> to vector<8x8xf32>
    %19 = vector.extract_strided_slice %11 {offsets = [0, 24], sizes = [8, 8], strides = [1, 1]} : vector<8x32xf32> to vector<8x8xf32>
    %20 = vector.shape_cast %16 : vector<8x8xf32> to vector<1x8x8xf32>
    %21 = vector.shape_cast %17 : vector<8x8xf32> to vector<1x8x8xf32>
    %22 = vector.shape_cast %18 : vector<8x8xf32> to vector<1x8x8xf32>
    %23 = vector.shape_cast %19 : vector<8x8xf32> to vector<1x8x8xf32>
    %24 = tpu.concatenate %20, %21, %22, %23 in 0 : vector<1x8x8xf32>, vector<1x8x8xf32>, vector<1x8x8xf32>, vector<1x8x8xf32> -> vector<4x8x8xf32>
    %25 = arith.truncf %24 : vector<4x8x8xf32> to vector<4x8x8xbf16>
    %26 = vector.extract_strided_slice %13 {offsets = [0, 0], sizes = [16, 8], strides = [1, 1]} : vector<16x64xf32> to vector<16x8xf32>
    %27 = vector.extract_strided_slice %13 {offsets = [0, 8], sizes = [16, 8], strides = [1, 1]} : vector<16x64xf32> to vector<16x8xf32>
    %28 = vector.extract_strided_slice %13 {offsets = [0, 16], sizes = [16, 8], strides = [1, 1]} : vector<16x64xf32> to vector<16x8xf32>
    %29 = vector.extract_strided_slice %13 {offsets = [0, 24], sizes = [16, 8], strides = [1, 1]} : vector<16x64xf32> to vector<16x8xf32>
    %30 = vector.shape_cast %26 : vector<16x8xf32> to vector<1x16x8xf32>
    %31 = vector.shape_cast %27 : vector<16x8xf32> to vector<1x16x8xf32>
    %32 = vector.shape_cast %28 : vector<16x8xf32> to vector<1x16x8xf32>
    %33 = vector.shape_cast %29 : vector<16x8xf32> to vector<1x16x8xf32>
    %34 = tpu.concatenate %30, %31, %32, %33 in 0 : vector<1x16x8xf32>, vector<1x16x8xf32>, vector<1x16x8xf32>, vector<1x16x8xf32> -> vector<4x16x8xf32>
    %35 = arith.truncf %34 : vector<4x16x8xf32> to vector<4x16x8xbf16>
    %36 = vector.extract_strided_slice %13 {offsets = [0, 32], sizes = [16, 8], strides = [1, 1]} : vector<16x64xf32> to vector<16x8xf32>
    %37 = vector.extract_strided_slice %13 {offsets = [0, 40], sizes = [16, 8], strides = [1, 1]} : vector<16x64xf32> to vector<16x8xf32>
    %38 = vector.extract_strided_slice %13 {offsets = [0, 48], sizes = [16, 8], strides = [1, 1]} : vector<16x64xf32> to vector<16x8xf32>
    %39 = vector.extract_strided_slice %13 {offsets = [0, 56], sizes = [16, 8], strides = [1, 1]} : vector<16x64xf32> to vector<16x8xf32>
    %40 = vector.shape_cast %36 : vector<16x8xf32> to vector<1x16x8xf32>
    %41 = vector.shape_cast %37 : vector<16x8xf32> to vector<1x16x8xf32>
    %42 = vector.shape_cast %38 : vector<16x8xf32> to vector<1x16x8xf32>
    %43 = vector.shape_cast %39 : vector<16x8xf32> to vector<1x16x8xf32>
    %44 = tpu.concatenate %40, %41, %42, %43 in 0 : vector<1x16x8xf32>, vector<1x16x8xf32>, vector<1x16x8xf32>, vector<1x16x8xf32> -> vector<4x16x8xf32>
    %45 = arith.truncf %44 : vector<4x16x8xf32> to vector<4x16x8xbf16>
    "tpu.trace_start"() <{level = 10 : i32, message = "hqd,hkd->hqk"}> : () -> ()
    %cst_21 = arith.constant dense<0.000000e+00> : vector<4x8x16xf32>
    %46 = tpu.matmul %25, %35, %cst_21 {dimension_numbers = #tpu.dot_dimension_numbers<[2], [2], [1], [1], [0, 0, 0, 1, 1, 1], [0], [0]>} : vector<4x8x8xbf16>, vector<4x16x8xbf16>, vector<4x8x16xf32> -> vector<4x8x16xf32>
    "tpu.trace_stop"() : () -> ()
    %47 = vector.shape_cast %7 : vector<8x16xf32> to vector<1x8x16xf32>
    %48 = vector.broadcast %47 : vector<1x8x16xf32> to vector<4x8x16xf32>
    %49 = arith.addf %46, %48 : vector<4x8x16xf32>
    %cst_22 = arith.constant dense<0xFF800000> : vector<4x8xf32>
    %50 = vector.multi_reduction <maximumf>, %49, %cst_22 [2] : vector<4x8x16xf32> to vector<4x8xf32>
    %51 = vector.shape_cast %50 : vector<4x8xf32> to vector<4x8x1xf32>
    %52 = vector.broadcast %51 : vector<4x8x1xf32> to vector<4x8x16xf32>
    %53 = arith.subf %49, %52 : vector<4x8x16xf32>
    %54 = math.exp %53 : vector<4x8x16xf32>
    %cst_23 = arith.constant dense<0.000000e+00> : vector<4x8xf32>
    %55 = vector.multi_reduction <add>, %54, %cst_23 [2] : vector<4x8x16xf32> to vector<4x8xf32>
    %56 = vector.shape_cast %55 : vector<4x8xf32> to vector<4x8x1xf32>
    %57 = tpu.reciprocal %56 {approx = true} : vector<4x8x1xf32> -> vector<4x8x1xf32>
    %58 = vector.broadcast %57 : vector<4x8x1xf32> to vector<4x8x16xf32>
    %59 = arith.mulf %54, %58 : vector<4x8x16xf32>
    %c0_24 = arith.constant 0 : index
    %c0_25 = arith.constant 0 : index
    %c0_26 = arith.constant 0 : index
    %c0_27 = arith.constant 0 : index
    %60 = vector.load %arg16[%c0_24, %c0_25, %c0_26, %c0_27] : memref<1x4x8x16xf32, #tpu.memory_space<vmem>>, vector<1x4x8x16xf32>
    %61 = vector.shape_cast %60 : vector<1x4x8x16xf32> to vector<4x8x16xf32>
    %62 = vector.shape_cast %59 : vector<4x8x16xf32> to vector<1x4x8x16xf32>
    tpu.vector_store %arg16[%c0_24, %c0_25, %c0_26, %c0_27], %62 {strides = array<i32>} : memref<1x4x8x16xf32, #tpu.memory_space<vmem>>, vector<1x4x8x16xf32>,
    %63 = arith.truncf %59 : vector<4x8x16xf32> to vector<4x8x16xbf16>
    "tpu.trace_start"() <{level = 10 : i32, message = "hqk,hkd->hqd"}> : () -> ()
    %cst_28 = arith.constant dense<0.000000e+00> : vector<4x8x8xf32>
    %64 = tpu.matmul %63, %45, %cst_28 {dimension_numbers = #tpu.dot_dimension_numbers<[2], [1], [1], [2], [0, 0, 0, 1, 1, 2], [0], [0]>} : vector<4x8x16xbf16>, vector<4x16x8xbf16>, vector<4x8x8xf32> -> vector<4x8x8xf32>
    "tpu.trace_stop"() : () -> ()
    %65 = vector.extract_strided_slice %64 {offsets = [0, 0, 0], sizes = [1, 8, 8], strides = [1, 1, 1]} : vector<4x8x8xf32> to vector<1x8x8xf32>
    %66 = vector.shape_cast %65 : vector<1x8x8xf32> to vector<8x8xf32>
    %67 = vector.extract_strided_slice %64 {offsets = [1, 0, 0], sizes = [1, 8, 8], strides = [1, 1, 1]} : vector<4x8x8xf32> to vector<1x8x8xf32>
    %68 = vector.shape_cast %67 : vector<1x8x8xf32> to vector<8x8xf32>
    %69 = vector.extract_strided_slice %64 {offsets = [2, 0, 0], sizes = [1, 8, 8], strides = [1, 1, 1]} : vector<4x8x8xf32> to vector<1x8x8xf32>
    %70 = vector.shape_cast %69 : vector<1x8x8xf32> to vector<8x8xf32>
    %71 = vector.extract_strided_slice %64 {offsets = [3, 0, 0], sizes = [1, 8, 8], strides = [1, 1, 1]} : vector<4x8x8xf32> to vector<1x8x8xf32>
    %72 = vector.shape_cast %71 : vector<1x8x8xf32> to vector<8x8xf32>
    %73 = tpu.concatenate %66, %68, %70, %72 in 1 : vector<8x8xf32>, vector<8x8xf32>, vector<8x8xf32>, vector<8x8xf32> -> vector<8x32xf32>
    %74 = arith.truncf %73 : vector<8x32xf32> to vector<8x32xbf16>
    %cst_29 = arith.constant dense<0.000000e+00> : vector<8x32xf32>
    %75 = tpu.matmul %74, %14, %cst_29 {dimension_numbers = #tpu.dot_dimension_numbers<[1], [0], [0], [1], [0, 0, 1, 1], [], []>} : vector<8x32xbf16>, vector<32x32xbf16>, vector<8x32xf32> -> vector<8x32xf32>
    %76 = arith.addf %75, %15 : vector<8x32xf32>
    %cst_30 = arith.constant dense<0.000000e+00> : vector<8xf32>
    %77 = vector.multi_reduction <add>, %76, %cst_30 [1] : vector<8x32xf32> to vector<8xf32>
    %78 = vector.shape_cast %77 : vector<8xf32> to vector<8x1xf32>
    %cst_31 = arith.constant 3.200000e+01 : f32
    %79 = vector.broadcast %cst_31 : f32 to vector<8x1xf32>
    %80 = arith.divf %78, %79 : vector<8x1xf32>
    %81 = vector.broadcast %80 : vector<8x1xf32> to vector<8x32xf32>
    %82 = arith.subf %76, %81 : vector<8x32xf32>
    %83 = arith.mulf %82, %82 : vector<8x32xf32>
    %cst_32 = arith.constant dense<0.000000e+00> : vector<8xf32>
    %84 = vector.multi_reduction <add>, %83, %cst_32 [1] : vector<8x32xf32> to vector<8xf32>
    %85 = vector.shape_cast %84 : vector<8xf32> to vector<8x1xf32>
    %cst_33 = arith.constant 3.200000e+01 : f32
    %86 = vector.broadcast %cst_33 : f32 to vector<8x1xf32>
    %87 = arith.divf %85, %86 : vector<8x1xf32>
    %88 = vector.broadcast %80 : vector<8x1xf32> to vector<8x32xf32>
    %89 = arith.subf %76, %88 : vector<8x32xf32>
    %cst_34 = arith.constant 9.99999974E-6 : f32
    %90 = vector.broadcast %cst_34 : f32 to vector<8x1xf32>
    %91 = arith.addf %87, %90 : vector<8x1xf32>
    %92 = math.rsqrt %91 : vector<8x1xf32>
    %93 = vector.broadcast %92 : vector<8x1xf32> to vector<8x32xf32>
    %94 = arith.mulf %89, %93 : vector<8x32xf32>
    %95 = arith.truncf %94 : vector<8x32xf32> to vector<8x32xbf16>
    %c0_35 = arith.constant 0 : index
    %c0_36 = arith.constant 0 : index
    %96 = vector.load %arg10[%c0_35, %c0_36] : memref<32x32xbf16, #tpu.memory_space<vmem>>, vector<32x32xbf16>
    %cst_37 = arith.constant dense<0.000000e+00> : vector<8x32xf32>
    %97 = tpu.matmul %95, %96, %cst_37 {dimension_numbers = #tpu.dot_dimension_numbers<[1], [0], [0], [1], [0, 0, 1, 1], [], []>} : vector<8x32xbf16>, vector<32x32xbf16>, vector<8x32xf32> -> vector<8x32xf32>
    %c0_38 = arith.constant 0 : index
    %c0_39 = arith.constant 0 : index
    %98 = vector.load %arg11[%c0_38, %c0_39] : memref<32x64xbf16, #tpu.memory_space<vmem>>, vector<32x64xbf16>
    %cst_40 = arith.constant dense<0.000000e+00> : vector<8x64xf32>
    %99 = tpu.matmul %5, %98, %cst_40 {dimension_numbers = #tpu.dot_dimension_numbers<[1], [0], [0], [1], [0, 0, 1, 1], [], []>} : vector<8x32xbf16>, vector<32x64xbf16>, vector<8x64xf32> -> vector<8x64xf32>
    %c0_41 = arith.constant 0 : index
    %c0_42 = arith.constant 0 : index
    %100 = vector.load %arg12[%c0_41, %c0_42] : memref<32x32xbf16, #tpu.memory_space<vmem>>, vector<32x32xbf16>
    %101 = vector.extract_strided_slice %97 {offsets = [0, 0], sizes = [8, 8], strides = [1, 1]} : vector<8x32xf32> to vector<8x8xf32>
    %102 = vector.extract_strided_slice %97 {offsets = [0, 8], sizes = [8, 8], strides = [1, 1]} : vector<8x32xf32> to vector<8x8xf32>
    %103 = vector.extract_strided_slice %97 {offsets = [0, 16], sizes = [8, 8], strides = [1, 1]} : vector<8x32xf32> to vector<8x8xf32>
    %104 = vector.extract_strided_slice %97 {offsets = [0, 24], sizes = [8, 8], strides = [1, 1]} : vector<8x32xf32> to vector<8x8xf32>
    %105 = vector.shape_cast %101 : vector<8x8xf32> to vector<1x8x8xf32>
    %106 = vector.shape_cast %102 : vector<8x8xf32> to vector<1x8x8xf32>
    %107 = vector.shape_cast %103 : vector<8x8xf32> to vector<1x8x8xf32>
    %108 = vector.shape_cast %104 : vector<8x8xf32> to vector<1x8x8xf32>
    %109 = tpu.concatenate %105, %106, %107, %108 in 0 : vector<1x8x8xf32>, vector<1x8x8xf32>, vector<1x8x8xf32>, vector<1x8x8xf32> -> vector<4x8x8xf32>
    %110 = arith.truncf %109 : vector<4x8x8xf32> to vector<4x8x8xbf16>
    %111 = vector.extract_strided_slice %99 {offsets = [0, 0], sizes = [8, 8], strides = [1, 1]} : vector<8x64xf32> to vector<8x8xf32>
    %112 = vector.extract_strided_slice %99 {offsets = [0, 8], sizes = [8, 8], strides = [1, 1]} : vector<8x64xf32> to vector<8x8xf32>
    %113 = vector.extract_strided_slice %99 {offsets = [0, 16], sizes = [8, 8], strides = [1, 1]} : vector<8x64xf32> to vector<8x8xf32>
    %114 = vector.extract_strided_slice %99 {offsets = [0, 24], sizes = [8, 8], strides = [1, 1]} : vector<8x64xf32> to vector<8x8xf32>
    %115 = vector.shape_cast %111 : vector<8x8xf32> to vector<1x8x8xf32>
    %116 = vector.shape_cast %112 : vector<8x8xf32> to vector<1x8x8xf32>
    %117 = vector.shape_cast %113 : vector<8x8xf32> to vector<1x8x8xf32>
    %118 = vector.shape_cast %114 : vector<8x8xf32> to vector<1x8x8xf32>
    %119 = tpu.concatenate %115, %116, %117, %118 in 0 : vector<1x8x8xf32>, vector<1x8x8xf32>, vector<1x8x8xf32>, vector<1x8x8xf32> -> vector<4x8x8xf32>
    %120 = arith.truncf %119 : vector<4x8x8xf32> to vector<4x8x8xbf16>
    %121 = vector.extract_strided_slice %99 {offsets = [0, 32], sizes = [8, 8], strides = [1, 1]} : vector<8x64xf32> to vector<8x8xf32>
    %122 = vector.extract_strided_slice %99 {offsets = [0, 40], sizes = [8, 8], strides = [1, 1]} : vector<8x64xf32> to vector<8x8xf32>
    %123 = vector.extract_strided_slice %99 {offsets = [0, 48], sizes = [8, 8], strides = [1, 1]} : vector<8x64xf32> to vector<8x8xf32>
    %124 = vector.extract_strided_slice %99 {offsets = [0, 56], sizes = [8, 8], strides = [1, 1]} : vector<8x64xf32> to vector<8x8xf32>
    %125 = vector.shape_cast %121 : vector<8x8xf32> to vector<1x8x8xf32>
    %126 = vector.shape_cast %122 : vector<8x8xf32> to vector<1x8x8xf32>
    %127 = vector.shape_cast %123 : vector<8x8xf32> to vector<1x8x8xf32>
    %128 = vector.shape_cast %124 : vector<8x8xf32> to vector<1x8x8xf32>
    %129 = tpu.concatenate %125, %126, %127, %128 in 0 : vector<1x8x8xf32>, vector<1x8x8xf32>, vector<1x8x8xf32>, vector<1x8x8xf32> -> vector<4x8x8xf32>
    %130 = arith.truncf %129 : vector<4x8x8xf32> to vector<4x8x8xbf16>
    "tpu.trace_start"() <{level = 10 : i32, message = "hqd,hkd->hqk"}> : () -> ()
    %cst_43 = arith.constant dense<0.000000e+00> : vector<4x8x8xf32>
    %131 = tpu.matmul %110, %120, %cst_43 {dimension_numbers = #tpu.dot_dimension_numbers<[2], [2], [1], [1], [0, 0, 0, 1, 1, 1], [0], [0]>} : vector<4x8x8xbf16>, vector<4x8x8xbf16>, vector<4x8x8xf32> -> vector<4x8x8xf32>
    "tpu.trace_stop"() : () -> ()
    %132 = vector.shape_cast %9 : vector<8x8xf32> to vector<1x8x8xf32>
    %133 = vector.broadcast %132 : vector<1x8x8xf32> to vector<4x8x8xf32>
    %134 = arith.addf %131, %133 : vector<4x8x8xf32>
    %cst_44 = arith.constant dense<0xFF800000> : vector<4x8xf32>
    %135 = vector.multi_reduction <maximumf>, %134, %cst_44 [2] : vector<4x8x8xf32> to vector<4x8xf32>
    %136 = vector.shape_cast %135 : vector<4x8xf32> to vector<4x8x1xf32>
    %137 = vector.broadcast %136 : vector<4x8x1xf32> to vector<4x8x8xf32>
    %138 = arith.subf %134, %137 : vector<4x8x8xf32>
    %139 = math.exp %138 : vector<4x8x8xf32>
    %cst_45 = arith.constant dense<0.000000e+00> : vector<4x8xf32>
    %140 = vector.multi_reduction <add>, %139, %cst_45 [2] : vector<4x8x8xf32> to vector<4x8xf32>
    %141 = vector.shape_cast %140 : vector<4x8xf32> to vector<4x8x1xf32>
    %142 = tpu.reciprocal %141 {approx = true} : vector<4x8x1xf32> -> vector<4x8x1xf32>
    %143 = vector.broadcast %142 : vector<4x8x1xf32> to vector<4x8x8xf32>
    %144 = arith.mulf %139, %143 : vector<4x8x8xf32>
    %c0_46 = arith.constant 0 : index
    %c0_47 = arith.constant 0 : index
    %c0_48 = arith.constant 0 : index
    %c0_49 = arith.constant 0 : index
    %145 = vector.load %arg17[%c0_46, %c0_47, %c0_48, %c0_49] : memref<1x4x8x8xf32, #tpu.memory_space<vmem>>, vector<1x4x8x8xf32>
    %146 = vector.shape_cast %145 : vector<1x4x8x8xf32> to vector<4x8x8xf32>
    %147 = vector.shape_cast %144 : vector<4x8x8xf32> to vector<1x4x8x8xf32>
    tpu.vector_store %arg17[%c0_46, %c0_47, %c0_48, %c0_49], %147 {strides = array<i32>} : memref<1x4x8x8xf32, #tpu.memory_space<vmem>>, vector<1x4x8x8xf32>,
    %148 = arith.truncf %144 : vector<4x8x8xf32> to vector<4x8x8xbf16>
    "tpu.trace_start"() <{level = 10 : i32, message = "hqk,hkd->hqd"}> : () -> ()
    %cst_50 = arith.constant dense<0.000000e+00> : vector<4x8x8xf32>
    %149 = tpu.matmul %148, %130, %cst_50 {dimension_numbers = #tpu.dot_dimension_numbers<[2], [1], [1], [2], [0, 0, 0, 1, 1, 2], [0], [0]>} : vector<4x8x8xbf16>, vector<4x8x8xbf16>, vector<4x8x8xf32> -> vector<4x8x8xf32>
    "tpu.trace_stop"() : () -> ()
    %150 = vector.extract_strided_slice %149 {offsets = [0, 0, 0], sizes = [1, 8, 8], strides = [1, 1, 1]} : vector<4x8x8xf32> to vector<1x8x8xf32>
    %151 = vector.shape_cast %150 : vector<1x8x8xf32> to vector<8x8xf32>
    %152 = vector.extract_strided_slice %149 {offsets = [1, 0, 0], sizes = [1, 8, 8], strides = [1, 1, 1]} : vector<4x8x8xf32> to vector<1x8x8xf32>
    %153 = vector.shape_cast %152 : vector<1x8x8xf32> to vector<8x8xf32>
    %154 = vector.extract_strided_slice %149 {offsets = [2, 0, 0], sizes = [1, 8, 8], strides = [1, 1, 1]} : vector<4x8x8xf32> to vector<1x8x8xf32>
    %155 = vector.shape_cast %154 : vector<1x8x8xf32> to vector<8x8xf32>
    %156 = vector.extract_strided_slice %149 {offsets = [3, 0, 0], sizes = [1, 8, 8], strides = [1, 1, 1]} : vector<4x8x8xf32> to vector<1x8x8xf32>
    %157 = vector.shape_cast %156 : vector<1x8x8xf32> to vector<8x8xf32>
    %158 = tpu.concatenate %151, %153, %155, %157 in 1 : vector<8x8xf32>, vector<8x8xf32>, vector<8x8xf32>, vector<8x8xf32> -> vector<8x32xf32>
    %159 = arith.truncf %158 : vector<8x32xf32> to vector<8x32xbf16>
    %cst_51 = arith.constant dense<0.000000e+00> : vector<8x32xf32>
    %160 = tpu.matmul %159, %100, %cst_51 {dimension_numbers = #tpu.dot_dimension_numbers<[1], [0], [0], [1], [0, 0, 1, 1], [], []>} : vector<8x32xbf16>, vector<32x32xbf16>, vector<8x32xf32> -> vector<8x32xf32>
    %161 = arith.addf %160, %94 : vector<8x32xf32>
    %cst_52 = arith.constant dense<0.000000e+00> : vector<8xf32>
    %162 = vector.multi_reduction <add>, %161, %cst_52 [1] : vector<8x32xf32> to vector<8xf32>
    %163 = vector.shape_cast %162 : vector<8xf32> to vector<8x1xf32>
    %cst_53 = arith.constant 3.200000e+01 : f32
    %164 = vector.broadcast %cst_53 : f32 to vector<8x1xf32>
    %165 = arith.divf %163, %164 : vector<8x1xf32>
    %166 = vector.broadcast %165 : vector<8x1xf32> to vector<8x32xf32>
    %167 = arith.subf %161, %166 : vector<8x32xf32>
    %168 = arith.mulf %167, %167 : vector<8x32xf32>
    %cst_54 = arith.constant dense<0.000000e+00> : vector<8xf32>
    %169 = vector.multi_reduction <add>, %168, %cst_54 [1] : vector<8x32xf32> to vector<8xf32>
    %170 = vector.shape_cast %169 : vector<8xf32> to vector<8x1xf32>
    %cst_55 = arith.constant 3.200000e+01 : f32
    %171 = vector.broadcast %cst_55 : f32 to vector<8x1xf32>
    %172 = arith.divf %170, %171 : vector<8x1xf32>
    %173 = vector.broadcast %165 : vector<8x1xf32> to vector<8x32xf32>
    %174 = arith.subf %161, %173 : vector<8x32xf32>
    %cst_56 = arith.constant 9.99999974E-6 : f32
    %175 = vector.broadcast %cst_56 : f32 to vector<8x1xf32>
    %176 = arith.addf %172, %175 : vector<8x1xf32>
    %177 = math.rsqrt %176 : vector<8x1xf32>
    %178 = vector.broadcast %177 : vector<8x1xf32> to vector<8x32xf32>
    %179 = arith.mulf %174, %178 : vector<8x32xf32>
    %180 = arith.truncf %179 : vector<8x32xf32> to vector<8x32xbf16>
    %c0_57 = arith.constant 0 : index
    %c0_58 = arith.constant 0 : index
    %181 = vector.load %arg13[%c0_57, %c0_58] : memref<32x64xbf16, #tpu.memory_space<vmem>>, vector<32x64xbf16>
    %cst_59 = arith.constant dense<0.000000e+00> : vector<8x64xf32>
    %182 = tpu.matmul %180, %181, %cst_59 {dimension_numbers = #tpu.dot_dimension_numbers<[1], [0], [0], [1], [0, 0, 1, 1], [], []>} : vector<8x32xbf16>, vector<32x64xbf16>, vector<8x64xf32> -> vector<8x64xf32>
    %cst_60 = arith.constant 0.000000e+00 : f32
    %183 = vector.broadcast %cst_60 : f32 to vector<8x64xf32>
    %184 = arith.maximumf %182, %183 : vector<8x64xf32>
    %185 = arith.truncf %184 : vector<8x64xf32> to vector<8x64xbf16>
    %c0_61 = arith.constant 0 : index
    %c0_62 = arith.constant 0 : index
    %186 = vector.load %arg14[%c0_61, %c0_62] : memref<64x32xbf16, #tpu.memory_space<vmem>>, vector<64x32xbf16>
    %cst_63 = arith.constant dense<0.000000e+00> : vector<8x32xf32>
    %187 = tpu.matmul %185, %186, %cst_63 {dimension_numbers = #tpu.dot_dimension_numbers<[1], [0], [0], [1], [0, 0, 1, 1], [], []>} : vector<8x64xbf16>, vector<64x32xbf16>, vector<8x32xf32> -> vector<8x32xf32>
    %188 = arith.addf %187, %179 : vector<8x32xf32>
    %cst_64 = arith.constant dense<0.000000e+00> : vector<8xf32>
    %189 = vector.multi_reduction <add>, %188, %cst_64 [1] : vector<8x32xf32> to vector<8xf32>
    %190 = vector.shape_cast %189 : vector<8xf32> to vector<8x1xf32>
    %cst_65 = arith.constant 3.200000e+01 : f32
    %191 = vector.broadcast %cst_65 : f32 to vector<8x1xf32>
    %192 = arith.divf %190, %191 : vector<8x1xf32>
    %193 = vector.broadcast %192 : vector<8x1xf32> to vector<8x32xf32>
    %194 = arith.subf %188, %193 : vector<8x32xf32>
    %195 = arith.mulf %194, %194 : vector<8x32xf32>
    %cst_66 = arith.constant dense<0.000000e+00> : vector<8xf32>
    %196 = vector.multi_reduction <add>, %195, %cst_66 [1] : vector<8x32xf32> to vector<8xf32>
    %197 = vector.shape_cast %196 : vector<8xf32> to vector<8x1xf32>
    %cst_67 = arith.constant 3.200000e+01 : f32
    %198 = vector.broadcast %cst_67 : f32 to vector<8x1xf32>
    %199 = arith.divf %197, %198 : vector<8x1xf32>
    %200 = vector.broadcast %192 : vector<8x1xf32> to vector<8x32xf32>
    %201 = arith.subf %188, %200 : vector<8x32xf32>
    %cst_68 = arith.constant 9.99999974E-6 : f32
    %202 = vector.broadcast %cst_68 : f32 to vector<8x1xf32>
    %203 = arith.addf %199, %202 : vector<8x1xf32>
    %204 = math.rsqrt %203 : vector<8x1xf32>
    %205 = vector.broadcast %204 : vector<8x1xf32> to vector<8x32xf32>
    %206 = arith.mulf %201, %205 : vector<8x32xf32>
    %c0_69 = arith.constant 0 : index
    %c0_70 = arith.constant 0 : index
    %c0_71 = arith.constant 0 : index
    %207 = vector.load %arg15[%c0_69, %c0_70, %c0_71] : memref<1x8x32xf32, #tpu.memory_space<vmem>>, vector<1x8x32xf32>
    %208 = vector.shape_cast %207 : vector<1x8x32xf32> to vector<8x32xf32>
    %209 = vector.shape_cast %206 : vector<8x32xf32> to vector<1x8x32xf32>
    tpu.vector_store %arg15[%c0_69, %c0_70, %c0_71], %209 {strides = array<i32>} : memref<1x8x32xf32, #tpu.memory_space<vmem>>, vector<1x8x32xf32>,
    return
  }
  func.func @transform_0(%arg0: i32, %arg1: i32) -> (i32, i32, i32) {
    %c0_i32 = arith.constant 0 : i32
    %c0_i32_0 = arith.constant 0 : i32
    return %arg0, %arg1, %c0_i32 : i32, i32, i32
  }
  func.func @transform_1(%arg0: i32, %arg1: i32) -> (i32, i32, i32) {
    %c0_i32 = arith.constant 0 : i32
    %c0_i32_0 = arith.constant 0 : i32
    %c0_i32_1 = arith.constant 0 : i32
    return %arg0, %c0_i32, %c0_i32_0 : i32, i32, i32
  }
  func.func @transform_2(%arg0: i32, %arg1: i32) -> (i32, i32, i32) {
    %c0_i32 = arith.constant 0 : i32
    %c0_i32_0 = arith.constant 0 : i32
    %c0_i32_1 = arith.constant 0 : i32
    return %arg0, %c0_i32, %c0_i32_0 : i32, i32, i32
  }
  func.func @transform_3(%arg0: i32, %arg1: i32) -> (i32, i32, i32) {
    %c0_i32 = arith.constant 0 : i32
    %c0_i32_0 = arith.constant 0 : i32
    return %arg0, %arg1, %c0_i32 : i32, i32, i32
  }
  func.func @transform_4(%arg0: i32, %arg1: i32) -> (i32, i32, i32) {
    %c0_i32 = arith.constant 0 : i32
    %c0_i32_0 = arith.constant 0 : i32
    return %arg0, %arg1, %c0_i32 : i32, i32, i32
  }
  func.func @transform_5(%arg0: i32, %arg1: i32) -> (i32, i32) {
    %c0_i32 = arith.constant 0 : i32
    %c0_i32_0 = arith.constant 0 : i32
    %c0_i32_1 = arith.constant 0 : i32
    return %c0_i32, %c0_i32_0 : i32, i32
  }
  func.func @transform_6(%arg0: i32, %arg1: i32) -> (i32, i32) {
    %c0_i32 = arith.constant 0 : i32
    %c0_i32_0 = arith.constant 0 : i32
    %c0_i32_1 = arith.constant 0 : i32
    return %c0_i32, %c0_i32_0 : i32, i32
  }
  func.func @transform_7(%arg0: i32, %arg1: i32) -> (i32, i32) {
    %c0_i32 = arith.constant 0 : i32
    %c0_i32_0 = arith.constant 0 : i32
    %c0_i32_1 = arith.constant 0 : i32
    return %c0_i32, %c0_i32_0 : i32, i32
  }
  func.func @transform_8(%arg0: i32, %arg1: i32) -> (i32, i32) {
    %c0_i32 = arith.constant 0 : i32
    %c0_i32_0 = arith.constant 0 : i32
    %c0_i32_1 = arith.constant 0 : i32
    return %c0_i32, %c0_i32_0 : i32, i32
  }
  func.func @transform_9(%arg0: i32, %arg1: i32) -> (i32, i32) {
    %c0_i32 = arith.constant 0 : i32
    %c0_i32_0 = arith.constant 0 : i32
    %c0_i32_1 = arith.constant 0 : i32
    return %c0_i32, %c0_i32_0 : i32, i32
  }
  func.func @transform_10(%arg0: i32, %arg1: i32) -> (i32, i32) {
    %c0_i32 = arith.constant 0 : i32
    %c0_i32_0 = arith.constant 0 : i32
    %c0_i32_1 = arith.constant 0 : i32
    return %c0_i32, %c0_i32_0 : i32, i32
  }
  func.func @transform_11(%arg0: i32, %arg1: i32) -> (i32, i32) {
    %c0_i32 = arith.constant 0 : i32
    %c0_i32_0 = arith.constant 0 : i32
    %c0_i32_1 = arith.constant 0 : i32
    return %c0_i32, %c0_i32_0 : i32, i32
  }
  func.func @transform_12(%arg0: i32, %arg1: i32) -> (i32, i32) {
    %c0_i32 = arith.constant 0 : i32
    %c0_i32_0 = arith.constant 0 : i32
    %c0_i32_1 = arith.constant 0 : i32
    return %c0_i32, %c0_i32_0 : i32, i32
  }
  func.func @transform_13(%arg0: i32, %arg1: i32) -> (i32, i32, i32) {
    %c0_i32 = arith.constant 0 : i32
    %c0_i32_0 = arith.constant 0 : i32
    return %arg0, %arg1, %c0_i32 : i32, i32, i32
  }
  func.func @transform_14(%arg0: i32, %arg1: i32) -> (i32, i32, i32, i32) {
    %c0_i32 = arith.constant 0 : i32
    %c0_i32_0 = arith.constant 0 : i32
    %c0_i32_1 = arith.constant 0 : i32
    return %arg0, %c0_i32, %arg1, %c0_i32_0 : i32, i32, i32, i32
  }
  func.func @transform_15(%arg0: i32, %arg1: i32) -> (i32, i32, i32, i32) {
    %c0_i32 = arith.constant 0 : i32
    %c0_i32_0 = arith.constant 0 : i32
    %c0_i32_1 = arith.constant 0 : i32
    return %arg0, %c0_i32, %arg1, %c0_i32_0 : i32, i32, i32, i32
  }
}

</mosaic_0001>

<bundles_post_ra>
// kernel: tpu_custom_call.1
= control target key start
LH: loop header
LB: loop body
LE: loop exit
PB: predicated region body
PF: predicated region fallthrough
CT: control target
= control target key end

     0   :  { %s4221_s0 = inlined_call_operand.vmem [shape: bf16[2,16,32], index: 0, kind: input, shape index: {}]   ;;  %s4222_s1 = inlined_call_operand.vmem [shape: bf16[2,16,32], index: 1, kind: input, shape index: {}]   ;;  %s4223_s2 = inlined_call_operand.hbm [shape: bf16[2,8,32], index: 2, kind: input, shape index: {}]   ;;  %s4224_s3 = inlined_call_operand.vmem [shape: f32[2,16,16], index: 3, kind: input, shape index: {}]   ;;  %s4225_s4 = inlined_call_operand.vmem [shape: f32[2,16,8], index: 4, kind: input, shape index: {}]   ;;  %s4226_s5 = inlined_call_operand.vmem [shape: bf16[32,32], index: 5, kind: input, shape index: {}]   ;;  %s4227_s6 = inlined_call_operand.vmem [shape: bf16[32,64], index: 6, kind: input, shape index: {}]   ;;  %s4228_s7 = inlined_call_operand.hbm [shape: bf16[32,32], index: 7, kind: input, shape index: {}]   ;;  %s4229_s8 = inlined_call_operand.hbm [shape: bf16[32,32], index: 8, kind: input, shape index: {}]   ;;  %s4230_s9 = inlined_call_operand.vmem [shape: bf16[32,64], index: 9, kind: input, shape index: {}]   ;;  %s4231_s10 = inlined_call_operand.hbm [shape: bf16[32,32], index: 10, kind: input, shape index: {}]   ;;  %s4232_s11 = inlined_call_operand.hbm [shape: bf16[32,64], index: 11, kind: input, shape index: {}]   ;;  %s4233_s12 = inlined_call_operand.vmem [shape: bf16[64,32], index: 12, kind: input, shape index: {}]   ;;  %s4234_s13 = inlined_call_operand.hbm [shape: f32[2,16,32], index: 13, kind: output, shape index: {0}]   ;;  %s4235_s14 = inlined_call_operand.hbm [shape: f32[2,4,16,16], index: 14, kind: output, shape index: {1}]   ;;  %s4236_s15 = inlined_call_operand.vmem [shape: f32[2,4,16,8], index: 15, kind: output, shape index: {2}]  }
   0x1   :  { %4261 = sst [smem:[#allocation28_spill]] %s4221_s0 }
   0x2   :  { %4262 = sst [smem:[#allocation29_spill]] %s4222_s1 }
   0x3   :  { %4263 = sst [smem:[#allocation30_spill]] %s4223_s2 }
   0x4   :  { %4264 = sst [smem:[#allocation31_spill]] %s4224_s3 }
   0x5   :  { %4265 = sst [smem:[#allocation32_spill]] %s4225_s4 }
   0x6   :  { %4266 = sst [smem:[#allocation33_spill]] %s4226_s5 }
   0x7   :  { %4267 = sst [smem:[#allocation34_spill]] %s4227_s6 }
   0x8   :  { %4268 = sst [smem:[#allocation35_spill]] %s4228_s7 }
   0x9   :  { %4269 = sst [smem:[#allocation36_spill]] %s4229_s8 }
   0xa   :  { %4270 = sst [smem:[#allocation37_spill]] %s4230_s9 }
   0xb   :  { %4271 = sst [smem:[#allocation38_spill]] %s4231_s10 }
   0xc   :  { %4272 = sst [smem:[#allocation39_spill]] %s4232_s11 }
   0xd   :  { %4273 = sst [smem:[#allocation40_spill]] %s4233_s12 }
   0xe   :  { %4274 = sst [smem:[#allocation41_spill]] %s4234_s13 }
   0xf   :  { %4275 = sst [smem:[#allocation42_spill]] %s4235_s14 }
  0x10   :  { %4276 = sst [smem:[#allocation43_spill]] %s4236_s15 }
  0x11   :  { %21 = vsyncpa [#allocation3], 0 }
  0x12   :  { %23 = vsyncpa [#allocation3 + $0x1], 0 }
  0x13   :  { %24 = vsyncpa [#allocation6], 0 }
  0x14   :  { %25 = vsyncpa [#allocation9], 0 }
  0x15   :  { %26 = vsyncpa [#allocation4], 0 }
  0x16   :  { %28 = vsyncpa [#allocation4 + $0x1], 0 }
  0x17   :  { %29 = vsyncpa [#allocation13], 0 }
  0x18   :  { %31 = vsyncpa [#allocation13 + $0x1], 0  ;;  %s3510_s18 = smov 0   ;;  %s3512_s19 = smov 0  }
  0x19   :  { %s3514_s20 = smov 0   ;;  %s3516_s21 = smov 0  }
  0x1a   :  { %s3518_s22 = smov 0   ;;  %s3520_s23 = smov 0  }
  0x1b   :  { %s3522_s24 = smov 0   ;;  %s3524_s25 = smov 0  }
  0x1c   :  { %s3526_s26 = smov 0   ;;  %s3528_s27 = smov 0  }
  0x1d   :  { %s3530_s28 = smov 0  }
  0x1e LB: > { %4277 = sst [smem:[#allocation20_spill]] %s3392_s24  ;;  %s2567_s29 = sadd.s32 4294967295, %s3408_s28   ;;  %s3408_s28 = sphi %s3530_s28, %s37_s28   ;;  %s3404_s27 = sphi %s3528_s27, %s4326_s27   ;;  %s3400_s26 = sphi %s3526_s26, %s4325_s26   ;;  %s3396_s25 = sphi %s3524_s25, %s4324_s25   ;;  %s3392_s24 = sphi %s3522_s24, %s4323_s24   ;;  %s3388_s23 = sphi %s3520_s23, %s4332_s23   ;;  %s3384_s22 = sphi %s3518_s22, %s4331_s22   ;;  %s3380_s21 = sphi %s3516_s21, %s4330_s21   ;;  %s3376_s20 = sphi %s3514_s20, %s4329_s20   ;;  %s3372_s19 = sphi %s3512_s19, %s4328_s19   ;;  %s3368_s18 = sphi %s3510_s18, %s4327_s18  }
  0x1f   : > { %4278 = sst [smem:[#allocation21_spill]] %s3396_s25  ;;  %p2569_p0 = scmp.ge.s32.totalorder %s3408_s28, 1 }
  0x20   : > { %4279 = sst [smem:[#allocation22_spill]] %s3400_s26  ;;  %p3567_p1 = scmp.eq.s32.totalorder %s2567_s29, 0 }
  0x21   : > { %4280 = sst [smem:[#allocation23_spill]] %s3404_s27  ;;  %p3571_p2 = scmp.eq.s32.totalorder %s2567_s29, 3 }
  0x22   : > { %s4281_s30 = scalar_select %p3567_p1, 1, 0 }
  0x23   : > { %s4282_s16 = scalar_select %p3571_p2, 1, 0 }
  0x24   : > { %p442_p3 = scmp.lt.s32.totalorder %s3408_s28, 5  ;;  %s3410_s15 = smov [#allocation5]  }
  0x25   : > { %s460_s13 = sshll.u32 %s3410_s15, 4  ;;  %s3411_s29 = smov [#allocation8]   ;;  %s3580_s13 = int_to_ptr.vmem [resolvable:$true] %s460_s13 }
  0x26   : > { %p3576_p4 = pnand %p2569_p0, %p442_p3  ;;  %s489_s12 = sshll.u32 %s3411_s29, 4  ;;  %s3590_s12 = int_to_ptr.vmem [resolvable:$true] %s489_s12 }
  0x27   : > { %s3412_s4 = smov [#allocation7]   ;;  %s4286_s7 = sld [smem:[#allocation35_spill]] }
  0x28   : > { %s4283_s17 = scalar_select %p3576_p4, 1, 0 }
  0x29   : > { %p2893_p5 = pneg %p3576_p4  ;;  %s473_s9 = sshll.u32 %s3412_s4, 4  ;;  %s3592_s9 = int_to_ptr.vmem [resolvable:$true] %s473_s9 }
  0x2a   : > { %4284 = sst [smem:[#allocation24_spill]] %s4283_s17 }
  0x2b   : > { %p3586_p6 = pnand %p2893_p5, %p3567_p1 }
  0x2d   : > { %s3104_s1 = scalar_lea.hbm %s4286_s7, 256  ;;  %p3602_p8 = pneg %p3586_p6 }
  0x2e   : > { %p3105_p7 = scmp.ne.s32.totalorder %s4286_s7, %s3104_s1  ;;  %p3111_p11 = scmp.lt.u32.totalorder %s3104_s1, %s4286_s7 }
  0x30   : > { %p3107_p9 = pnand %p3602_p8, %p3105_p7 }
  0x32   : > { %p3108_p10 = pneg %p3107_p9 }
  0x34   : > { %p3113_p12 = pnand %p3111_p11, %p3108_p10 }
  0x36   : > { %3116 = shalt.err (!%p3113_p12)
}
  0x37   : > { %s3117_s0 = scalar_lea.vmem %s3580_s13, 256  ;;  %p3125_p5 = scmp.lt.s32.totalorder %s3580_s13, %s3580_s13 }
  0x38   : > { %p3118_p13 = scmp.ne.s32.totalorder %s3580_s13, %s3117_s0  ;;  %p3126_p4 = scmp.lt.s32.totalorder %s3117_s0, %s3117_s0 }
  0x3a   : > { %p3120_p0 = pnand %p3118_p13, %p3602_p8  ;;  %p3127_p7 = por %p3126_p4, %p3125_p5 }
  0x3c   : > { %p3121_p3 = pneg %p3120_p0 }
  0x3e   : > { %p3128_p9 = pnand %p3127_p7, %p3121_p3 }
  0x40   : > { %3131 = shalt.err (!%p3128_p9)
}
  0x41   : > { %s3413_s3 = smov 64   ;;  %s3414_s1 = smov 4  }
  0x42   : > { %2896 = dma.hbm_to_vmem [thread:$0]  (!%p3586_p6), %s4286_s7, 256, %s3580_s13, [#allocation6], %s3413_s3, %s3413_s3, %s3414_s1  }
  0x43   : > { %s4288_s10 = sld [smem:[#allocation38_spill]] }
  0x49   : > { %s3132_s0 = scalar_lea.hbm %s4288_s10, 256 }
  0x4a   : > { %p3133_p4 = scmp.ne.s32.totalorder %s4288_s10, %s3132_s0  ;;  %p3139_p12 = scmp.lt.u32.totalorder %s3132_s0, %s4288_s10 }
  0x4c   : > { %p3135_p10 = pnand %p3133_p4, %p3602_p8 }
  0x4e   : > { %p3136_p11 = pneg %p3135_p10 }
  0x50   : > { %p3141_p13 = pnand %p3139_p12, %p3136_p11 }
  0x52   : > { %3144 = shalt.err (!%p3141_p13)
}
  0x53   : > { %s3145_s13 = scalar_lea.vmem %s3590_s12, 256  ;;  %p3153_p7 = scmp.lt.s32.totalorder %s3590_s12, %s3590_s12 }
  0x54   : > { %p3146_p0 = scmp.ne.s32.totalorder %s3590_s12, %s3145_s13  ;;  %p3154_p9 = scmp.lt.s32.totalorder %s3145_s13, %s3145_s13 }
  0x56   : > { %p3148_p3 = pnand %p3146_p0, %p3602_p8  ;;  %p3155_p4 = por %p3154_p9, %p3153_p7 }
  0x58   : > { %p3149_p5 = pneg %p3148_p3 }
  0x5a   : > { %p3156_p10 = pnand %p3155_p4, %p3149_p5 }
  0x5c   : > { %3159 = shalt.err (!%p3156_p10)
}
  0x5d   : > { %2902 = dma.hbm_to_vmem [thread:$0]  (!%p3586_p6), %s4288_s10, 256, %s3590_s12, [#allocation9], %s3413_s3, %s3413_s3, %s3414_s1  }
  0x5e   : > { %s4289_s8 = sld [smem:[#allocation36_spill]] }
  0x64   : > { %s3160_s6 = scalar_lea.hbm %s4289_s8, 256 }
  0x65   : > { %p3161_p11 = scmp.ne.s32.totalorder %s4289_s8, %s3160_s6  ;;  %p3167_p0 = scmp.lt.u32.totalorder %s3160_s6, %s4289_s8 }
  0x67   : > { %p3163_p12 = pnand %p3161_p11, %p3602_p8 }
  0x69   : > { %p3164_p13 = pneg %p3163_p12 }
  0x6b   : > { %p3169_p3 = pnand %p3167_p0, %p3164_p13 }
  0x6d   : > { %3172 = shalt.err (!%p3169_p3)
}
  0x6e   : > { %s3173_s12 = scalar_lea.vmem %s3592_s9, 256  ;;  %p3181_p4 = scmp.lt.s32.totalorder %s3592_s9, %s3592_s9 }
  0x6f   : > { %p3174_p5 = scmp.ne.s32.totalorder %s3592_s9, %s3173_s12  ;;  %p3182_p10 = scmp.lt.s32.totalorder %s3173_s12, %s3173_s12 }
  0x71   : > { %p3176_p7 = pnand %p3174_p5, %p3602_p8  ;;  %p3183_p11 = por %p3182_p10, %p3181_p4 }
  0x73   : > { %p3177_p9 = pneg %p3176_p7 }
  0x75   : > { %p3184_p12 = pnand %p3183_p11, %p3177_p9 }
  0x77   : > { %3187 = shalt.err (!%p3184_p12)
}
  0x78   : > { %2899 = dma.hbm_to_vmem [thread:$0]  (!%p3586_p6), %s4289_s8, 256, %s3592_s9, [#allocation6], %s3413_s3, %s3413_s3, %s3414_s1  }
  0x79   : > { %s3415_s24 = smov [#allocation10]   ;;  %s4290_s11 = sld [smem:[#allocation39_spill]] }
  0x7a   : > { %s502_s25 = sshll.u32 %s3415_s24, 4  ;;  %s503_s25 = int_to_ptr.vmem [resolvable:$true] %s502_s25 }
  0x7f   : > { %s3188_s15 = scalar_lea.hbm %s4290_s11, 256 }
  0x80   : > { %p3189_p13 = scmp.ne.s32.totalorder %s4290_s11, %s3188_s15  ;;  %p3195_p5 = scmp.lt.u32.totalorder %s3188_s15, %s4290_s11 }
  0x82   : > { %p3191_p0 = pnand %p3189_p13, %p3602_p8 }
  0x84   : > { %p3192_p3 = pneg %p3191_p0 }
  0x86   : > { %p3197_p7 = pnand %p3195_p5, %p3192_p3 }
  0x88   : > { %3200 = shalt.err (!%p3197_p7)
}
  0x89   : > { %s3201_s9 = scalar_lea.vmem %s503_s25, 256  ;;  %p3209_p11 = scmp.lt.s32.totalorder %s503_s25, %s503_s25 }
  0x8a   : > { %p3202_p9 = scmp.ne.s32.totalorder %s503_s25, %s3201_s9  ;;  %p3210_p12 = scmp.lt.s32.totalorder %s3201_s9, %s3201_s9 }
  0x8c   : > { %p3204_p4 = pnand %p3202_p9, %p3602_p8  ;;  %p3211_p2 = por %p3210_p12, %p3209_p11 }
  0x8e   : > { %p3205_p10 = pneg %p3204_p4 }
  0x90   : > { %p3212_p1 = pnand %p3211_p2, %p3205_p10 }
  0x92   : > { %3215 = shalt.err (!%p3212_p1)
}
  0x93   : > { %2905 = dma.hbm_to_vmem [thread:$0]  (!%p3586_p6), %s4290_s11, 256, %s503_s25, [#allocation9], %s3413_s3, %s3413_s3, %s3414_s1  }
  0x94   : > { %s2568_s5 = sadd.s32 4294967294, %s3408_s28   ;;  %s46_s14 = sadd.s32 1, %s3400_s26 }
  0x95   : > { %s49_s24 = sadd.s32 1, %s3404_s27  ;;  %p47_p1 = scmp.ge.s32.totalorder %s46_s14, 2 }
  0x96   : > { %s110_s17 = sadd.s32 1, %s3388_s23  ;;  %p117_p2 = scmp.ne.s32.totalorder %s3388_s23, %s3384_s22 }
  0x97   : > { %p118_p8 = scmp.eq.s32.totalorder %s3408_s28, 0  ;;  %s4334_s14 = smov (%p47_p1, %s46_s14), 0 }
  0x98   : > { %4291 = sst [smem:[#allocation25_spill]] %s4334_s14  ;;  %s4336_s24 = smov (!%p47_p1, %s49_s24), %s3404_s27 }
  0x99   : > { %p3709_p13 = por %p118_p8, %p117_p2  ;;  %p123_p6 = scmp.ne.s32.totalorder %s3384_s22, %s3380_s21 }
  0x9a   : > { %p51_p0 = scmp.ge.s32.totalorder %s4336_s24, 2  ;;  %s358_s1 = ssub.s32 %s3400_s26, %s4334_s14 }
  0x9b   : > { %p4293_p3 = scmp.ne.s32.totalorder %s4281_s30, 0  ;;  %s362_s6 = sadd.s32 1, %s3376_s20 }
  0x9c   : > { %s4338_s24 = smov (%p51_p0, %s4336_s24), 0  ;;  %p372_p7 = scmp.ne.s32.totalorder %s3376_s20, %s3372_s19 }
  0x9d   : > { %p3719_p5 = por %p4293_p3, %p123_p6  ;;  %4295 = sst [smem:[#allocation26_spill]] %s4338_s24 }
  0x9e   : > { %p378_p9 = scmp.ne.s32.totalorder %s3372_s19, %s3368_s18  ;;  %s107_s15 = ssub.s32 %s3404_s27, %s4338_s24 }
  0x9f   : > { %p379_p4 = scmp.eq.s32.totalorder %s2568_s5, 3  ;;  %p108_p10 = scmp.eq.s32.totalorder %s107_s15, 0 }
  0xa0   : > { %s359_s21 = sor.u32 %s358_s1, %s107_s15  ;;  %p4296_p12 = scmp.ne.s32.totalorder %s4282_s16, 0 }
  0xa1   : > { %p360_p11 = scmp.eq.s32.totalorder %s359_s21, 0  ;;  %p3744_p2 = por %p379_p4, %p378_p9 }
  0xa2   : > { %p3734_p1 = por %p4296_p12, %p372_p7  ;;  %p2921_p8 = scmp.lt.s32.totalorder %s3408_s28, 4 }
  0xa3   : > { %s3739_s29 = scalar_select %p108_p10, %s3388_s23, %s110_s17  }
  0xa4   : > { %s4297_s4 = scalar_select %p3734_p1, 1, 0 }
  0xa5   : > { %4298 = sst [smem:[#allocation27_spill]] %s3739_s29  ;;  %s538_s9 = sand.u32 1, %s3388_s23  }
  0xa6   : > { %s3742_s0 = scalar_select %p360_p11, %s3376_s20, %s362_s6  }
  0xa7   : > { %s4299_s12 = scalar_select %p3744_p2, 1, 0 }
  0xa8   : > { %s2576_s13 = sshll.u32 %s3404_s27, 6  ;;  %s2575_s2 = sshll.u32 %s538_s9, 2 }
  0xa9   : > { %s4300_s15 = sld [smem:[#allocation30_spill]]  ;;  %s542_s17 = scalar_lea.vmem [#allocation2], %s2575_s2 }
  0xaa   : > { %s549_s6 = sshll.u32 %s542_s17, 4  ;;  %p3758_p6 = pnand %p2921_p8, %p3709_p13  ;;  %s3762_s6 = int_to_ptr.vmem [resolvable:$true] %s549_s6 }
  0xab   : > { %s539_s7 = scalar_lea.sflag [#allocation3], %s538_s9 }
  0xac   : > { %p3218_p3 = pneg %p3758_p6 }
  0xaf   : > { %s3754_s16 = scalar_lea.hbm %s4300_s15, %s2576_s13  ;;  %s3221_s3 = scalar_lea.hbm %s4300_s15, 128 }
  0xb0   : > { %s3216_s8 = scalar_lea.hbm %s3754_s16, 64  ;;  %p3222_p13 = scmp.lt.u32.totalorder %s3754_s16, %s4300_s15 }
  0xb1   : > { %p3217_p0 = scmp.ne.s32.totalorder %s3754_s16, %s3216_s8  ;;  %p3223_p4 = scmp.lt.u32.totalorder %s3221_s3, %s3216_s8 }
  0xb2   : > { %p3225_p11 = scmp.lt.u32.totalorder %s3216_s8, %s3754_s16 }
  0xb3   : > { %p3219_p7 = pnand %p3218_p3, %p3217_p0  ;;  %p3224_p10 = por %p3223_p4, %p3222_p13 }
  0xb5   : > { %p3220_p9 = pneg %p3219_p7  ;;  %p3226_p12 = por %p3225_p11, %p3224_p10 }
  0xb7   : > { %p3227_p8 = pnand %p3226_p12, %p3220_p9 }
  0xb9   : > { %3230 = shalt.err (!%p3227_p8)
}
  0xba   : > { %s3231_s9 = scalar_lea.vmem %s3762_s6, 64  ;;  %s3416_s17 = smov [#allocation2]  }
  0xbb   : > { %p3232_p0 = scmp.ne.s32.totalorder %s3762_s6, %s3231_s9  ;;  %s3236_s13 = sshll.u32 %s3416_s17, 4  ;;  %s3237_s13 = int_to_ptr.vmem [resolvable:$false] %s3236_s13 }
  0xbc   : > { %s3238_s2 = scalar_lea.vmem %s3237_s13, 128  ;;  %p3239_p1 = scmp.lt.s32.totalorder %s3762_s6, %s3237_s13 }
  0xbd   : > { %p3234_p7 = pnand %p3232_p0, %p3218_p3  ;;  %p3240_p13 = scmp.lt.s32.totalorder %s3238_s2, %s3231_s9 }
  0xbf   : > { %p3235_p2 = pneg %p3234_p7  ;;  %p3241_p4 = por %p3240_p13, %p3239_p1 }
  0xc1   : > { %p3242_p10 = pnand %p3241_p4, %p3235_p2 }
  0xc3   : > { %3245 = shalt.err (!%p3242_p10)
}
  0xc4   : > { %2909 = dma.hbm_to_vmem [thread:$0]  (!%p3758_p6), %s3754_s16, 64, %s3762_s6, %s539_s7  }
  0xc5   : > { %s4302_s8 = sld [smem:[#allocation24_spill]] }
  0xcb   : > { %p4303_p9 = scmp.ne.s32.totalorder %s4302_s8, 0 }
  0xcc   : > { %s582_s3 = sand.u32 (!%p4303_p9), 1, %s3384_s22  }
  0xcd   : > { %580 = sbr.rel (%p4303_p9) target bundleno = 4458 (0x116a), region = 72  ;;  %s3792_s5 = sshll.u32 (!%p4303_p9), %s582_s3, 2 }
  0xce   : > { %s583_s1 = scalar_lea.sflag (!%p4303_p9), [#allocation3], %s582_s3 }
  0xd4   : > { %3347 = dma.done.wait (%p3719_p5), %s583_s1, 64  }
  0xd5   : > { %3349 = vsyncadd (%p3719_p5), %s583_s1, 4294967232  ;;  %p4304_p1 = scmp.ne.s32.totalorder %s4281_s30, 0 }
  0xd7   : > { %3351 = dma.done.wait (%p4304_p1), [#allocation6], 512  }
  0xd8   : > { %3353 = vsyncadd (%p4304_p1), [#allocation6], 4294966784 }
  0xd9   : > { %3355 = dma.done.wait (%p4304_p1), [#allocation9], 512  }
  0xda   : > { %3357 = vsyncadd (%p4304_p1), [#allocation9], 4294966784  ;;  %s4305_s7 = sld [smem:[#allocation21_spill]]  ;;  %s4306_s16 = sld [smem:[#allocation20_spill]]  ;;  %v3417_v0 = vmov 0.0   ;;  %vm3418_vm0 = vmmov 0  }
  0xdb   : > { %2707 = vmatprep.subr.bf16.mxu0 %v3417_v0  ;;  %2715 = vmatprep.subr.bf16.mxu1 %v3417_v0  ;;  %s4307_s3 = sld [smem:[#allocation33_spill]]  ;;  %s4308_s10 = sld [smem:[#allocation34_spill]]  ;;  %vm739_vm1 = vcmask 261120   ;;  %vm891_vm2 = vcmask 64512   ;;  %vm1076_vm3 = vcmask 130048   ;;  %vm1331_vm4 = vcmask 195584  }
  0xdc   : > { %2711 = vmatprep.mubr.msk.bf16.mxu0 %vm3418_vm0, %v3417_v0  ;;  %2719 = vmatprep.mubr.msk.bf16.mxu1 %vm3418_vm0, %v3417_v0  ;;  %s4309_s24 = sld [smem:[#allocation28_spill]]  ;;  %s3419_s11 = smov 120   ;;  %vm1796_vm5 = vcmask 1043456   ;;  %vm2165_vm6 = vcmask 523264  }
  0xdd   : > { %s3420_s26 = smov 104   ;;  %s3421_s27 = smov 112  }
  0xde   : > { %s4311_s15 = sld [smem:[#allocation31_spill]]  ;;  %s4256_s2 = smov 24  }
  0xdf   : > { %p4318_p3 = scmp.ne.s32.totalorder %s4297_s4, 0 }
  0xe0   : > { %p687_p2 = scmp.lt.s32.totalorder %s4305_s7, 1  ;;  %p689_p6 = scmp.lt.s32.totalorder %s4306_s16, 1 }
  0xe1   : > { %v3047_v1 = vld [vmem:[%s4307_s3] sm:$0xff]   ;;  %v3049_v3 = vld [vmem:[%s4307_s3 + $0x8] sm:$0xff]  }
  0xe2   : > { %s688_s30 = scalar_select %p687_p2, %s4305_s7, 1  ;;  %v3048_v2 = vld [vmem:[%s4308_s10] sm:$0xff]   ;;  %2708 = vmatpush3.bf16.msra.mxu0 %v3047_v1  ;;  %v3050_v4 = vld [vmem:[%s4308_s10 + $0x8] sm:$0xff]  }
  0xe3   : > { %s690_s25 = scalar_select %p689_p6, %s4306_s16, 1  ;;  %2716 = vmatpush3.bf16.msra.mxu1 %v3048_v2  ;;  %2709 = vmatprep.subr.bf16.mxu0 %v3417_v0 }
  0xe4   : > { %s2586_s6 = sshll.u32 %s688_s30, 1  ;;  %s2648_s13 = sshll.u32 %s688_s30, 3  ;;  %2717 = vmatprep.subr.bf16.mxu1 %v3417_v0 }
  0xe5   : > { %s3817_s21 = sadd.s32 %s2586_s6, %s690_s25  ;;  %s4310_s30 = sld [smem:[#allocation29_spill]] }
  0xe6   : > { %s2587_s9 = sshll.u32 %s3817_s21, 2  ;;  %2710 = vmatpush3.bf16.msra.mxu0 %v3049_v3  ;;  %s3423_s6 = smov 8  }
  0xe7   : > { %s694_s14 = scalar_lea.vmem %s4309_s24, %s2587_s9  ;;  %2718 = vmatpush3.bf16.msra.mxu1 %v3050_v4  ;;  %2723 = vmatprep.subr.bf16.mxu0 %v3417_v0  ;;  %s3422_s9 = smov 96  }
  0xe8   : > { %v3840_v5 = vld [vmem:[%s694_s14] sm:$0xf]  ;;  %2729 = vmatprep.subr.bf16.mxu1 %v3417_v0  ;;  %s2591_s14 = sshll.u32 %s3817_s21, 3 }
  0xe9   : > { %2712 = vmatmul.mubr.msk.bf16.vlgmr.msra.gmra.mrb[0].mxu0 %vm739_vm1, %v3840_v5  ;;  %s707_s17 = scalar_lea.vmem %s4311_s15, %s2591_s14 }
  0xea   : > { %2725 = vmatprep.mubr.msk.bf16.mxu0 %vm3418_vm0, %v3417_v0  ;;  %v721_v40 = vld [vmem:[%s707_s17] sm:$0xff] }
  0xeb   : > { %s699_s29 = scalar_lea.vmem %s4310_s30, %s2648_s13  ;;  %s3913_s13 = sand.u32 1, %s3372_s19  }
  0xec   : > { %v3051_v6 = vld [vmem:[%s699_s29] sm:$0xff]   ;;  %s2584_s1 = sshll.u32 %s3913_s13, 5  ;;  %s3424_s30 = smov 16  }
  0xed   : > { %2720 = vmatmul.mubr.msk.bf16.vlgmr.msra.gmra.mrb[0].mxu1 %vm739_vm1, %v3051_v6  ;;  %s3918_s25 = scalar_lea.vmem [#allocation12], %s2584_s1  ;;  %s4312_s29 = sld [smem:[#allocation37_spill]] }
  0xee   : > { %2731 = vmatprep.mubr.msk.bf16.mxu1 %vm3418_vm0, %v3417_v0  ;;  %s4044_s21 = scalar_lea.vmem [#allocation14], %s2584_s1  ;;  %s2229_s24 = scalar_lea.sflag [#allocation13], %s3913_s13 }
 0x1bc   : > { %v777_v7 = vpop.f32.mrb[0].mxu0 }
 0x1bd   : > { %854 = vrot.lane.b32.xlu1 %v777_v7, %s3419_s11  ;;  %v2713_v9 = vpop.f32.mrb[1].mxu0  ;;  %v863_v18 = vpack.c.bf16 %v777_v7, %v777_v7 }
 0x1be   : > { %v780_v11 = vpop.f32.mrb[2].mxu0 }
 0x1bf   : > { %v2714_v13 = vpop.f32.mrb[3].mxu0 }
 0x1c0   : > { %v841_v8 = vpop.f32.mrb[0].mxu1 }
 0x1c1   : > { %v2721_v10 = vpop.f32.mrb[1].mxu1 }
 0x1c2   : > { %v844_v12 = vpop.f32.mrb[2].mxu1 }
 0x1c3   : > { %v2722_v14 = vpop.f32.mrb[3].mxu1  ;;  %v3032_v15 = vpack.i.bf16 %v844_v12, %v841_v8  ;;  %v3852_v16 = vpack.c.bf16 %v844_v12, %v841_v8 }
 0x1c5   : > { %3033 = vrot.lane.b32.xlu0 %v3032_v15, %s3419_s11  ;;  %3043 = vrot.lane.b32.xlu1 %v3032_v15, %s3420_s26  ;;  %v896_v17 = vsel %vm891_vm2, %v3852_v16, 0 }
 0x1c6   : > { %2724 = vmatpush3.bf16.xpose.msra.mxu0 %v896_v17 }
 0x1c7   : > { %2735 = vmatprep.subr.bf16.mxu0 %v3417_v0 }
 0x1c9   : > { %3038 = vrot.lane.b32.xlu0 %v3032_v15, %s3421_s27  ;;  %860 = vrot.lane.b32.xlu1 %v777_v7, %s3420_s26 }
 0x1cd   : > { %857 = vrot.lane.b32.xlu0 %v777_v7, %s3421_s27  ;;  %2726 = vmatmul.mubr.msk.bf16.vlgmr.msra.gmra.mrb[4].mxu0 %vm891_vm2, %v863_v18 }
 0x1ce   : > { %2737 = vmatprep.mubr.msk.bf16.mxu0 %vm3418_vm0, %v3417_v0 }
 0x22f   : > { %v855_v19 = vpop.permute.xlu1 %854 }
 0x230   : > { %v864_v34 = vpack.c.bf16 %v855_v19, %v855_v19 }
 0x237   : > { %v3034_v20 = vpop.permute.xlu0 %3033  ;;  %v3044_v23 = vpop.permute.xlu1 %3043 }
 0x238   : > { %v3036_v21 = vunpack.i.h.bf16 %v3034_v20  ;;  %v3035_v22 = vunpack.i.l.bf16 %v3034_v20  ;;  %v3046_v25 = vunpack.i.h.bf16 %v3044_v23  ;;  %v3045_v27 = vunpack.i.l.bf16 %v3044_v23 }
 0x23a   : > { %v3865_v24 = vpack.c.bf16 %v3036_v21, %v3035_v22  ;;  %v3872_v32 = vpack.c.bf16 %v3046_v25, %v3045_v27 }
 0x23b   : > { %v3039_v26 = vpop.permute.xlu0 %3038  ;;  %v861_v38 = vpop.permute.xlu1 %860 }
 0x23c   : > { %v3041_v28 = vunpack.i.h.bf16 %v3039_v26  ;;  %v3040_v29 = vunpack.i.l.bf16 %v3039_v26  ;;  %v942_v30 = vsel %vm891_vm2, %v3865_v24, 0  ;;  %v1034_v36 = vsel %vm891_vm2, %v3872_v32, 0 }
 0x23d   : > { %2730 = vmatpush3.bf16.xpose.msra.mxu1 %v942_v30  ;;  %v866_v39 = vpack.c.bf16 %v861_v38, %v861_v38 }
 0x23e   : > { %v3869_v31 = vpack.c.bf16 %v3041_v28, %v3040_v29  ;;  %2741 = vmatprep.subr.bf16.mxu1 %v3417_v0 }
 0x23f   : > { %v858_v35 = vpop.permute.xlu0 %857 }
 0x240   : > { %v988_v33 = vsel %vm891_vm2, %v3869_v31, 0  ;;  %v865_v37 = vpack.c.bf16 %v858_v35, %v858_v35 }
 0x241   : > { %2736 = vmatpush3.bf16.xpose.msra.mxu0 %v988_v33 }
 0x242   : > { %2747 = vmatprep.subr.bf16.mxu0 %v3417_v0 }
 0x244   : > { %2732 = vmatmul.mubr.msk.bf16.vlgmr.msra.gmra.mrb[4].mxu1 %vm891_vm2, %v864_v34 }
 0x245   : > { %2742 = vmatpush3.bf16.xpose.msra.mxu1 %v1034_v36  ;;  %2743 = vmatprep.mubr.msk.bf16.mxu1 %vm3418_vm0, %v3417_v0 }
 0x246   : > { %2753 = vmatprep.subr.bf16.mxu1 %v3417_v0 }
 0x248   : > { %2738 = vmatmul.mubr.msk.bf16.vlgmr.msra.gmra.mrb[8].mxu0 %vm891_vm2, %v865_v37 }
 0x249   : > { %2749 = vmatprep.mubr.msk.bf16.mxu0 %vm3418_vm0, %v3417_v0 }
 0x24c   : > { %2744 = vmatmul.mubr.msk.bf16.vlgmr.msra.gmra.mrb[8].mxu1 %vm891_vm2, %v866_v39 }
 0x24d   : > { %2755 = vmatprep.mubr.msk.bf16.mxu1 %vm3418_vm0, %v3417_v0 }
 0x2a0   : > { %v932_v41 = vpop.f32.mrb[4].mxu0 }
 0x2a1   : > { %v933_v42 = vadd.f32 %v932_v41, %v721_v40  ;;  %v2727_v43 = vpop.f32.mrb[5].mxu0 }
 0x2a2   : > { %v935_v44 = vpop.f32.mrb[6].mxu0 }
 0x2a3   : > { %v2728_v45 = vpop.f32.mrb[7].mxu0  ;;  %v1077_v46 = vsel %vm1076_vm3, %v933_v42, -inf }
 0x2a4   : > { %1078 = vmax.xlane.f32.xlu0 %v1077_v46 }
 0x317   : > { %v978_v47 = vpop.f32.mrb[4].mxu1 }
 0x318   : > { %v979_v48 = vadd.f32 %v978_v47, %v721_v40  ;;  %v2733_v49 = vpop.f32.mrb[5].mxu1  ;;  %v3052_v47 = vld [vmem:[#allocation5] sm:$0xff]  }
 0x319   : > { %v981_v50 = vpop.f32.mrb[6].mxu1 }
 0x31a   : > { %v2734_v51 = vpop.f32.mrb[7].mxu1  ;;  %v1080_v52 = vsel %vm1076_vm3, %v979_v48, -inf }
 0x31b   : > { %1081 = vmax.xlane.f32.xlu1 %v1080_v52  ;;  %v1024_v53 = vpop.f32.mrb[8].mxu0 }
 0x31c   : > { %v1025_v54 = vadd.f32 %v1024_v53, %v721_v40  ;;  %v2739_v55 = vpop.f32.mrb[9].mxu0 }
 0x31d   : > { %v1027_v56 = vpop.f32.mrb[10].mxu0 }
 0x31e   : > { %v2740_v57 = vpop.f32.mrb[11].mxu0  ;;  %v1083_v58 = vsel %vm1076_vm3, %v1025_v54, -inf }
 0x31f   : > { %v1070_v59 = vpop.f32.mrb[8].mxu1  ;;  %1084 = vmax.xlane.f32.xlu0 %v1083_v58 }
 0x320   : > { %v1071_v60 = vadd.f32 %v1070_v59, %v721_v40  ;;  %v2745_v61 = vpop.f32.mrb[9].mxu1 }
 0x321   : > { %v1073_v62 = vpop.f32.mrb[10].mxu1 }
 0x322   : > { %v2746_v63 = vpop.f32.mrb[11].mxu1  ;;  %v1086_v1 = vsel %vm1076_vm3, %v1071_v60, -inf }
 0x323   : > { %1087 = vmax.xlane.f32.xlu0 %v1086_v1 }
 0x32c   : > { %1130 = vrot.lane.b32.xlu1 %v3852_v16, %s3422_s9 }
 0x331   : > { %v1079_v2 = vpop.xlane.xlu0 %1078 }
 0x332   : > { %v1089_v3 = vsub.f32 %v933_v42, %v1079_v2 }
 0x334   : > { %v1093_v4 = vmul.f32 1.442695, %v1089_v3 }
 0x336   : > { %3066 = vpow2.f32 %v1093_v4 }
 0x340   : > { %v3067_v6 = vpop.eup %3066 }
 0x341   : > { %v1101_v7 = vsel %vm1076_vm3, %v3067_v6, 0.0 }
 0x350   : > { %1102 = vadd.xlane.f32.xlu1 %v1101_v7 }
 0x3a8   : > { %v1082_v8 = vpop.xlane.xlu1 %1081 }
 0x3a9   : > { %v1090_v9 = vsub.f32 %v979_v48, %v1082_v8  ;;  %v3053_v48 = vld [vmem:[#allocation5 + $0x8] sm:$0xff]  }
 0x3ab   : > { %v1095_v10 = vmul.f32 1.442695, %v1090_v9 }
 0x3ac   : > { %v1131_v11 = vpop.permute.xlu1 %1130  ;;  %v1085_v12 = vpop.xlane.xlu0 %1084 }
 0x3ad   : > { %3068 = vpow2.f32 %v1095_v10  ;;  %v1091_v13 = vsub.f32 %v1025_v54, %v1085_v12  ;;  %2748 = vmatpush3.bf16.msra.mxu0 %v1131_v11 }
 0x3ae   : > { %2759 = vmatprep.subr.bf16.mxu0 %v3417_v0 }
 0x3af   : > { %v1097_v14 = vmul.f32 1.442695, %v1091_v13 }
 0x3b0   : > { %v1088_v15 = vpop.xlane.xlu0 %1087 }
 0x3b1   : > { %3070 = vpow2.f32 %v1097_v14  ;;  %v1092_v16 = vsub.f32 %v1071_v60, %v1088_v15 }
 0x3b3   : > { %v1099_v17 = vmul.f32 1.442695, %v1092_v16 }
 0x3b5   : > { %3072 = vpow2.f32 %v1099_v17 }
 0x3b7   : > { %v3069_v18 = vpop.eup %3068 }
 0x3b8   : > { %v1104_v19 = vsel %vm1076_vm3, %v3069_v18, 0.0 }
 0x3b9   : > { %1105 = vadd.xlane.f32.xlu0 %v1104_v19 }
 0x3bb   : > { %v3071_v20 = vpop.eup %3070 }
 0x3bc   : > { %v1107_v21 = vsel %vm1076_vm3, %v3071_v20, 0.0 }
 0x3bd   : > { %1108 = vadd.xlane.f32.xlu1 %v1107_v21  ;;  %v3057_v21 = vld [vmem:[#allocation7 + $0x8] sm:$0xff]  }
 0x3bf   : > { %v3073_v22 = vpop.eup %3072 }
 0x3c0   : > { %v1110_v23 = vsel %vm1076_vm3, %v3073_v22, 0.0 }
 0x3c1   : > { %1111 = vadd.xlane.f32.xlu0 %v1110_v23 }
 0x3ce   : > { %1224 = vrot.lane.b32.xlu1 %v3869_v31, %s3422_s9 }
 0x3d2   : > { %1271 = vrot.lane.b32.xlu1 %v3872_v32, %s3422_s9 }
 0x3d7   : > { %1177 = vrot.lane.b32.xlu0 %v3865_v24, %s3422_s9 }
 0x3dd   : > { %v1103_v25 = vpop.xlane.xlu1 %1102 }
 0x3de   : > { %3074 = vrcp.f32 %v1103_v25 }
 0x3e8   : > { %v3075_v26 = vpop.eup %3074 }
 0x3e9   : > { %v1117_v27 = vmul.f32 %v3075_v26, %v3067_v6  ;;  %v852_v6 = vunpack.c.l.bf16 %v3840_v5  ;;  %v3054_v5 = vld [vmem:[%s4312_s29] sm:$0xff]  }
 0x3eb   : > { %v1125_v28 = vpack.c.bf16 %v1117_v27, %v1117_v27  ;;  %1121 = vst.msk [vmem:[%s3918_s25] sm:$0xff] %vm1076_vm3, %v1117_v27 }
 0x3ed   : > { %2750 = vmatmul.mubr.msk.bf16.vlgmr.msra.gmra.mrb[12].mxu0 %vm1076_vm3, %v1125_v28 }
 0x3ee   : > { %2761 = vmatprep.mubr.msk.bf16.mxu0 %vm3418_vm0, %v3417_v0 }
 0x446   : > { %v1106_v24 = vpop.xlane.xlu0 %1105 }
 0x447   : > { %3076 = vrcp.f32 %v1106_v24 }
 0x44a   : > { %v1109_v29 = vpop.xlane.xlu1 %1108 }
 0x44b   : > { %3078 = vrcp.f32 %v1109_v29 }
 0x44e   : > { %v1225_v30 = vpop.permute.xlu1 %1224  ;;  %v1112_v31 = vpop.xlane.xlu0 %1111 }
 0x44f   : > { %3080 = vrcp.f32 %v1112_v31  ;;  %2760 = vmatpush3.bf16.msra.mxu0 %v1225_v30 }
 0x450   : > { %2771 = vmatprep.subr.bf16.mxu0 %v3417_v0 }
 0x451   : > { %v3077_v32 = vpop.eup %3076 }
 0x452   : > { %v1118_v33 = vmul.f32 %v3077_v32, %v3069_v18  ;;  %v1178_v34 = vpop.permute.xlu0 %1177  ;;  %v1272_v38 = vpop.permute.xlu1 %1271  ;;  %v3055_v18 = vld [vmem:[%s4312_s29 + $0x8] sm:$0xff]  }
 0x453   : > { %2754 = vmatpush3.bf16.msra.mxu1 %v1178_v34 }
 0x454   : > { %v1126_v35 = vpack.c.bf16 %v1118_v33, %v1118_v33  ;;  %2765 = vmatprep.subr.bf16.mxu1 %v3417_v0  ;;  %1122 = vst.msk [vmem:[%s3918_s25 + $0x8] sm:$0xff] %vm1076_vm3, %v1118_v33 }
 0x455   : > { %v3079_v36 = vpop.eup %3078 }
 0x456   : > { %v1119_v37 = vmul.f32 %v3079_v36, %v3071_v20  ;;  %2756 = vmatmul.mubr.msk.bf16.vlgmr.msra.gmra.mrb[12].mxu1 %vm1076_vm3, %v1126_v35  ;;  %v3056_v20 = vld [vmem:[#allocation7] sm:$0xff]  }
 0x457   : > { %2766 = vmatpush3.bf16.msra.mxu1 %v1272_v38  ;;  %2767 = vmatprep.mubr.msk.bf16.mxu1 %vm3418_vm0, %v3417_v0 }
 0x458   : > { %v1127_v39 = vpack.c.bf16 %v1119_v37, %v1119_v37  ;;  %2779 = vmatprep.subr.bf16.mxu1 %v3417_v0  ;;  %1123 = vst.msk [vmem:[%s3918_s25 + $0x10] sm:$0xff] %vm1076_vm3, %v1119_v37 }
 0x459   : > { %v3081_v40 = vpop.eup %3080 }
 0x45a   : > { %v1120_v41 = vmul.f32 %v3081_v40, %v3073_v22  ;;  %2762 = vmatmul.mubr.msk.bf16.vlgmr.msra.gmra.mrb[16].mxu0 %vm1076_vm3, %v1127_v39 }
 0x45b   : > { %2775 = vmatprep.mubr.msk.bf16.mxu0 %vm3418_vm0, %v3417_v0  ;;  %2772 = vmatpush3.bf16.msra.mxu0 %v3052_v47 }
 0x45c   : > { %v1128_v42 = vpack.c.bf16 %v1120_v41, %v1120_v41  ;;  %1124 = vst.msk [vmem:[%s3918_s25 + $0x18] sm:$0xff] %vm1076_vm3, %v1120_v41  ;;  %2773 = vmatprep.subr.bf16.mxu0 %v3417_v0 }
 0x45e   : > { %2768 = vmatmul.mubr.msk.bf16.vlgmr.msra.gmra.mrb[16].mxu1 %vm1076_vm3, %v1128_v42 }
 0x45f   : > { %2783 = vmatprep.mubr.msk.bf16.mxu1 %vm3418_vm0, %v3417_v0  ;;  %2774 = vmatpush3.bf16.msra.mxu0 %v3053_v48 }
 0x460   : > { %2787 = vmatprep.subr.bf16.mxu0 %v3417_v0  ;;  %2780 = vmatpush3.bf16.msra.mxu1 %v3056_v20 }
 0x461   : > { %2781 = vmatprep.subr.bf16.mxu1 %v3417_v0 }
 0x464   : > { %2782 = vmatpush3.bf16.msra.mxu1 %v3057_v21 }
 0x465   : > { %2795 = vmatprep.subr.bf16.mxu1 %v3417_v0 }
 0x4c0   : > { %v1170_v43 = vpop.f32.mrb[12].mxu0 }
 0x4c1   : > { %v2751_v44 = vpop.f32.mrb[13].mxu0 }
 0x4c2   : > { %v1173_v45 = vpop.f32.mrb[14].mxu0 }
 0x4c3   : > { %v2752_v46 = vpop.f32.mrb[15].mxu0 }
 0x529   : > { %v1217_v49 = vpop.f32.mrb[12].mxu1 }
 0x52a   : > { %1318 = vrot.lane.b32.xlu0 %v1217_v49, %s3423_s6  ;;  %v2757_v50 = vpop.f32.mrb[13].mxu1 }
 0x52b   : > { %v1220_v51 = vpop.f32.mrb[14].mxu1 }
 0x52c   : > { %v2758_v52 = vpop.f32.mrb[15].mxu1 }
 0x52d   : > { %v1264_v53 = vpop.f32.mrb[16].mxu0 }
 0x52e   : > { %1322 = vrot.lane.b32.xlu1 %v1264_v53, %s3424_s30  ;;  %v2763_v54 = vpop.f32.mrb[17].mxu0 }
 0x52f   : > { %v1267_v55 = vpop.f32.mrb[18].mxu0 }
 0x530   : > { %v2764_v56 = vpop.f32.mrb[19].mxu0 }
 0x531   : > { %v1311_v57 = vpop.f32.mrb[16].mxu1 }
 0x532   : > { %1326 = vrot.lane.b32.xlu0 %v1311_v57, %s4256_s2  ;;  %v2769_v58 = vpop.f32.mrb[17].mxu1  ;;  %s4313_s2 = scalar_lea.vmem [#allocation2], %s3792_s5 }
 0x533   : > { %v1314_v59 = vpop.f32.mrb[18].mxu1  ;;  %v720_v19 = vld [vmem:[%s4313_s2] sm:$0xf]  ;;  %s4317_s2 = sld [smem:[#allocation42_spill]] }
 0x534   : > { %v2770_v60 = vpop.f32.mrb[19].mxu1 }
 0x59c   : > { %v1319_v61 = vpop.permute.xlu0 %1318 }
 0x59d   : > { %v1329_v63 = vsel %vm891_vm2, %v1170_v43, %v1319_v61 }
 0x5a0   : > { %v1323_v62 = vpop.permute.xlu1 %1322 }
 0x5a1   : > { %v1330_v1 = vsel %vm1076_vm3, %v1329_v63, %v1323_v62 }
 0x5a4   : > { %v1327_v2 = vpop.permute.xlu0 %1326 }
 0x5a5   : > { %v1332_v3 = vsel %vm1331_vm4, %v1330_v1, %v1327_v2 }
 0x5a6   : > { %v1333_v4 = vpack.c.bf16 %v1332_v3, %v1332_v3 }
 0x5a8   : > { %2776 = vmatmul.mubr.msk.bf16.vlgmr.msra.gmra.mrb[20].mxu0 %vm739_vm1, %v1333_v4 }
 0x5a9   : > { %2791 = vmatprep.mubr.msk.bf16.mxu0 %vm3418_vm0, %v3417_v0  ;;  %2788 = vmatpush3.bf16.msra.mxu0 %v3054_v5 }
 0x5aa   : > { %2789 = vmatprep.subr.bf16.mxu0 %v3417_v0 }
 0x5ad   : > { %2790 = vmatpush3.bf16.msra.mxu0 %v3055_v18 }
 0x5ae   : > { %2801 = vmatprep.subr.bf16.mxu0 %v3417_v0 }
 0x5b0   : > { %2792 = vmatmul.mubr.msk.bf16.vlgmr.msra.gmra.mrb[24].mxu0 %vm739_vm1, %v720_v19 }
 0x5b1   : > { %2803 = vmatprep.mubr.msk.bf16.mxu0 %vm3418_vm0, %v3417_v0 }
 0x67b   : > { %v1383_v7 = vpop.f32.mrb[20].mxu0 }
 0x67c   : > { %v1384_v8 = vadd.f32 %v1383_v7, %v852_v6  ;;  %v2777_v9 = vpop.f32.mrb[21].mxu0 }
 0x67d   : > { %v1386_v10 = vpop.f32.mrb[22].mxu0 }
 0x67e   : > { %v2778_v11 = vpop.f32.mrb[23].mxu0  ;;  %v1389_v12 = vsel %vm739_vm1, %v1384_v8, 0.0 }
 0x67f   : > { %1390 = vadd.xlane.f32.xlu1 %v1389_v12 }
 0x683   : > { %v1516_v24 = vpop.f32.mrb[24].mxu0 }
 0x684   : > { %v2793_v29 = vpop.f32.mrb[25].mxu0  ;;  %v3980_v30 = vpack.c.bf16 %v1516_v24, %v1516_v24 }
 0x685   : > { %v1519_v31 = vpop.f32.mrb[26].mxu0 }
 0x686   : > { %v2794_v32 = vpop.f32.mrb[27].mxu0  ;;  %v1558_v33 = vsel %vm891_vm2, %v3980_v30, 0 }
 0x690   : > { %1544 = vrot.lane.b32.xlu1 %v1516_v24, %s3421_s27 }
 0x70c   : > { %v1391_v13 = vpop.xlane.xlu1 %1390 }
 0x70d   : > { %v1393_v14 = vmul.f32 0.03125, %v1391_v13 }
 0x70f   : > { %v1394_v15 = vsub.f32 %v1384_v8, %v1393_v14 }
 0x710   : > { %v1545_v37 = vpop.permute.xlu1 %1544 }
 0x711   : > { %v1395_v16 = vmul.f32 %v1394_v15, %v1394_v15  ;;  %v3992_v38 = vpack.c.bf16 %v1545_v37, %v1545_v37 }
 0x713   : > { %v1396_v17 = vsel %vm739_vm1, %v1395_v16, 0.0  ;;  %v1650_v42 = vsel %vm891_vm2, %v3992_v38, 0 }
 0x714   : > { %1397 = vadd.xlane.f32.xlu0 %v1396_v17 }
 0x72a   : > { %1541 = vrot.lane.b32.xlu0 %v1516_v24, %s3419_s11 }
 0x72e   : > { %1547 = vrot.lane.b32.xlu0 %v1516_v24, %s3420_s26 }
 0x7a1   : > { %v1398_v22 = vpop.xlane.xlu0 %1397 }
 0x7a2   : > { %v1399_v23 = vmul.f32 0.03125, %v1398_v22 }
 0x7a4   : > { %v1400_v25 = vadd.f32 1e-05, %v1399_v23 }
 0x7a5   : > { %v1542_v34 = vpop.permute.xlu0 %1541 }
 0x7a6   : > { %3082 = vrsqrt.f32 %v1400_v25  ;;  %v3987_v35 = vpack.c.bf16 %v1542_v34, %v1542_v34 }
 0x7a8   : > { %v1604_v36 = vsel %vm891_vm2, %v3987_v35, 0 }
 0x7a9   : > { %2802 = vmatpush3.bf16.xpose.msra.mxu0 %v1604_v36  ;;  %v1548_v45 = vpop.permute.xlu0 %1547 }
 0x7aa   : > { %2813 = vmatprep.subr.bf16.mxu0 %v3417_v0  ;;  %v4003_v46 = vpack.c.bf16 %v1548_v45, %v1548_v45 }
 0x7ac   : > { %v1696_v49 = vsel %vm891_vm2, %v4003_v46, 0 }
 0x7b0   : > { %v3083_v26 = vpop.eup %3082 }
 0x7b1   : > { %v3972_v27 = vmul.f32 %v3083_v26, %v1394_v15 }
 0x7b3   : > { %v1403_v28 = vpack.c.bf16 %v3972_v27, %v3972_v27 }
 0x7b5   : > { %2784 = vmatmul.mubr.msk.bf16.vlgmr.msra.gmra.mrb[20].mxu1 %vm739_vm1, %v1403_v28 }
 0x7b6   : > { %2797 = vmatprep.mubr.msk.bf16.mxu1 %vm3418_vm0, %v3417_v0  ;;  %2796 = vmatpush3.bf16.xpose.msra.mxu1 %v1558_v33 }
 0x7b7   : > { %2807 = vmatprep.subr.bf16.mxu1 %v3417_v0 }
 0x888   : > { %v1457_v39 = vpop.f32.mrb[20].mxu1 }
 0x889   : > { %v1536_v40 = vpack.c.bf16 %v1457_v39, %v1457_v39  ;;  %v2785_v41 = vpop.f32.mrb[21].mxu1  ;;  %1527 = vrot.lane.b32.xlu1 %v1457_v39, %s3419_s11  ;;  %1533 = vrot.lane.b32.xlu0 %v1457_v39, %s3420_s26  ;;  %s4314_s26 = sld [smem:[#allocation32_spill]]  ;;  %s2262_s11 = sshll.u32 %s3918_s25, 4  ;;  %s4105_s11 = int_to_ptr.vmem [resolvable:$true] %s2262_s11 }
 0x88a   : > { %v1460_v43 = vpop.f32.mrb[22].mxu1  ;;  %s3246_s15 = scalar_lea.vmem %s4105_s11, 512  ;;  %s3426_s25 = smov [#allocation12]  }
 0x88b   : > { %v2786_v44 = vpop.f32.mrb[23].mxu1  ;;  %2798 = vmatmul.mubr.msk.bf16.vlgmr.msra.gmra.mrb[24].mxu1 %vm891_vm2, %v1536_v40  ;;  %p3247_p5 = scmp.ne.s32.totalorder %s4105_s11, %s3246_s15  ;;  %s3250_s17 = sshll.u32 %s3426_s25, 4  ;;  %s3251_s17 = int_to_ptr.vmem [resolvable:$false] %s3250_s17 }
 0x88c   : > { %2808 = vmatpush3.bf16.xpose.msra.mxu1 %v1650_v42  ;;  %2809 = vmatprep.mubr.msk.bf16.mxu1 %vm3418_vm0, %v3417_v0  ;;  %s3252_s5 = scalar_lea.vmem %s3251_s17, 1024  ;;  %p3253_p8 = scmp.lt.s32.totalorder %s4105_s11, %s3251_s17 }
 0x88d   : > { %1530 = vrot.lane.b32.xlu1 %v1457_v39, %s3421_s27  ;;  %2819 = vmatprep.subr.bf16.mxu1 %v3417_v0  ;;  %p3248_p11 = pnand %p3247_p5, %p4318_p3  ;;  %p3254_p0 = scmp.lt.s32.totalorder %s3252_s5, %s3246_s15 }
 0x88f   : > { %s715_s27 = scalar_lea.vmem %s4314_s26, %s2591_s14  ;;  %s4315_s14 = smov 24  }
 0x890   : > { %v722_v54 = vld [vmem:[%s715_s27] sm:$0xff]  ;;  %s2642_s26 = sshll.u32 %s4305_s7, 3  ;;  %p3249_p12 = pneg %p3248_p11 }
 0x891   : > { %s4108_s27 = sadd.s32 %s4306_s16, %s2642_s26  ;;  %p3255_p7 = por %p3254_p0, %p3253_p8 }
 0x893   : > { %p3256_p13 = pnand %p3255_p7, %p3249_p12 }
 0x8fb   : > { %v1528_v47 = vpop.permute.xlu1 %1527  ;;  %v1534_v52 = vpop.permute.xlu0 %1533 }
 0x8fc   : > { %v1537_v48 = vpack.c.bf16 %v1528_v47, %v1528_v47  ;;  %v1539_v53 = vpack.c.bf16 %v1534_v52, %v1534_v52 }
 0x8fe   : > { %2804 = vmatmul.mubr.msk.bf16.vlgmr.msra.gmra.mrb[28].mxu0 %vm891_vm2, %v1537_v48 }
 0x8ff   : > { %2814 = vmatpush3.bf16.xpose.msra.mxu0 %v1696_v49  ;;  %v1531_v50 = vpop.permute.xlu1 %1530  ;;  %2815 = vmatprep.mubr.msk.bf16.mxu0 %vm3418_vm0, %v3417_v0 }
 0x900   : > { %v1538_v51 = vpack.c.bf16 %v1531_v50, %v1531_v50  ;;  %2825 = vmatprep.subr.bf16.mxu0 %v3417_v0 }
 0x902   : > { %2810 = vmatmul.mubr.msk.bf16.vlgmr.msra.gmra.mrb[28].mxu1 %vm891_vm2, %v1538_v51 }
 0x903   : > { %2821 = vmatprep.mubr.msk.bf16.mxu1 %vm3418_vm0, %v3417_v0 }
 0x906   : > { %2816 = vmatmul.mubr.msk.bf16.vlgmr.msra.gmra.mrb[32].mxu0 %vm891_vm2, %v1539_v53 }
 0x907   : > { %2827 = vmatprep.mubr.msk.bf16.mxu0 %vm3418_vm0, %v3417_v0 }
 0x95e   : > { %v1594_v55 = vpop.f32.mrb[24].mxu1 }
 0x95f   : > { %v1595_v56 = vadd.f32 %v1594_v55, %v722_v54  ;;  %v2799_v57 = vpop.f32.mrb[25].mxu1 }
 0x960   : > { %v1597_v58 = vpop.f32.mrb[26].mxu1 }
 0x961   : > { %v2800_v59 = vpop.f32.mrb[27].mxu1  ;;  %v1738_v60 = vsel %vm891_vm2, %v1595_v56, -inf }
 0x962   : > { %1739 = vmax.xlane.f32.xlu1 %v1738_v60 }
 0x9d1   : > { %v1640_v61 = vpop.f32.mrb[28].mxu0 }
 0x9d2   : > { %v1641_v62 = vadd.f32 %v1640_v61, %v722_v54  ;;  %v2805_v63 = vpop.f32.mrb[29].mxu0 }
 0x9d3   : > { %v1643_v1 = vpop.f32.mrb[30].mxu0 }
 0x9d4   : > { %v2806_v2 = vpop.f32.mrb[31].mxu0  ;;  %v1741_v3 = vsel %vm891_vm2, %v1641_v62, -inf }
 0x9d5   : > { %v1686_v4 = vpop.f32.mrb[28].mxu1  ;;  %1742 = vmax.xlane.f32.xlu0 %v1741_v3  ;;  %v3058_v2 = vld [vmem:[#allocation8] sm:$0xff]   ;;  %v3059_v3 = vld [vmem:[#allocation8 + $0x8] sm:$0xff]  }
 0x9d6   : > { %v1687_v6 = vadd.f32 %v1686_v4, %v722_v54  ;;  %v2811_v7 = vpop.f32.mrb[29].mxu1 }
 0x9d7   : > { %v1689_v8 = vpop.f32.mrb[30].mxu1 }
 0x9d8   : > { %v2812_v9 = vpop.f32.mrb[31].mxu1  ;;  %v1744_v10 = vsel %vm891_vm2, %v1687_v6, -inf }
 0x9d9   : > { %1745 = vmax.xlane.f32.xlu0 %v1744_v10  ;;  %v1732_v11 = vpop.f32.mrb[32].mxu0 }
 0x9da   : > { %v1733_v12 = vadd.f32 %v1732_v11, %v722_v54  ;;  %v2817_v13 = vpop.f32.mrb[33].mxu0 }
 0x9db   : > { %v1735_v14 = vpop.f32.mrb[34].mxu0 }
 0x9dc   : > { %v2818_v15 = vpop.f32.mrb[35].mxu0  ;;  %v1747_v16 = vsel %vm891_vm2, %v1733_v12, -inf }
 0x9dd   : > { %1748 = vmax.xlane.f32.xlu1 %v1747_v16 }
 0x9ee   : > { %1841 = vrot.lane.b32.xlu1 %v3987_v35, %s3422_s9 }
 0x9ef   : > { %1791 = vrot.lane.b32.xlu0 %v3980_v30, %s3422_s9  ;;  %v1740_v17 = vpop.xlane.xlu1 %1739 }
 0x9f0   : > { %v1750_v5 = vsub.f32 %v1595_v56, %v1740_v17 }
 0x9f2   : > { %v1754_v18 = vmul.f32 1.442695, %v1750_v5 }
 0x9f4   : > { %3084 = vpow2.f32 %v1754_v18 }
 0x9fe   : > { %v3085_v19 = vpop.eup %3084 }
 0x9ff   : > { %v1762_v20 = vsel %vm891_vm2, %v3085_v19, 0.0 }
 0xa0e   : > { %1763 = vadd.xlane.f32.xlu0 %v1762_v20 }
 0xa62   : > { %v1743_v21 = vpop.xlane.xlu0 %1742 }
 0xa63   : > { %v1751_v22 = vsub.f32 %v1641_v62, %v1743_v21 }
 0xa65   : > { %v1756_v23 = vmul.f32 1.442695, %v1751_v22 }
 0xa66   : > { %v1746_v25 = vpop.xlane.xlu0 %1745 }
 0xa67   : > { %3086 = vpow2.f32 %v1756_v23  ;;  %v1752_v26 = vsub.f32 %v1687_v6, %v1746_v25 }
 0xa69   : > { %v1758_v28 = vmul.f32 1.442695, %v1752_v26 }
 0xa6a   : > { %v1792_v24 = vpop.permute.xlu0 %1791  ;;  %v1749_v29 = vpop.xlane.xlu1 %1748 }
 0xa6b   : > { %3088 = vpow2.f32 %v1758_v28  ;;  %v1798_v30 = vsel %vm1796_vm5, %v1792_v24, 0  ;;  %v1753_v31 = vsub.f32 %v1733_v12, %v1749_v29 }
 0xa6c   : > { %2820 = vmatpush3.bf16.msra.mxu1 %v1798_v30 }
 0xa6d   : > { %v1760_v32 = vmul.f32 1.442695, %v1753_v31  ;;  %2831 = vmatprep.subr.bf16.mxu1 %v3417_v0 }
 0xa6e   : > { %v1842_v33 = vpop.permute.xlu1 %1841 }
 0xa6f   : > { %3090 = vpow2.f32 %v1760_v32  ;;  %v1847_v34 = vsel %vm1796_vm5, %v1842_v33, 0 }
 0xa70   : > { %2826 = vmatpush3.bf16.msra.mxu0 %v1847_v34 }
 0xa71   : > { %v3087_v35 = vpop.eup %3086  ;;  %2837 = vmatprep.subr.bf16.mxu0 %v3417_v0 }
 0xa72   : > { %v1765_v36 = vsel %vm891_vm2, %v3087_v35, 0.0 }
 0xa73   : > { %1766 = vadd.xlane.f32.xlu1 %v1765_v36  ;;  %v3061_v36 = vld [vmem:[#allocation10 + $0x8] sm:$0xff]  }
 0xa75   : > { %v3089_v37 = vpop.eup %3088 }
 0xa76   : > { %v1768_v39 = vsel %vm891_vm2, %v3089_v37, 0.0 }
 0xa77   : > { %1769 = vadd.xlane.f32.xlu0 %v1768_v39 }
 0xa79   : > { %v3091_v40 = vpop.eup %3090 }
 0xa7a   : > { %v1771_v41 = vsel %vm891_vm2, %v3091_v40, 0.0 }
 0xa7b   : > { %1772 = vadd.xlane.f32.xlu1 %v1771_v41 }
 0xa8c   : > { %1890 = vrot.lane.b32.xlu1 %v3992_v38, %s3422_s9 }
 0xa8d   : > { %1939 = vrot.lane.b32.xlu0 %v4003_v46, %s3422_s9 }
 0xa9b   : > { %v1764_v42 = vpop.xlane.xlu0 %1763 }
 0xa9c   : > { %3092 = vrcp.f32 %v1764_v42 }
 0xaa6   : > { %v3093_v43 = vpop.eup %3092 }
 0xaa7   : > { %v1778_v44 = vmul.f32 %v3093_v43, %v3085_v19 }
 0xaa9   : > { %v1786_v45 = vpack.c.bf16 %v1778_v44, %v1778_v44  ;;  %1782 = vst.msk [vmem:[%s4044_s21] sm:$0xff] %vm891_vm2, %v1778_v44 }
 0xaab   : > { %2822 = vmatmul.mubr.msk.bf16.vlgmr.msra.gmra.mrb[32].mxu1 %vm891_vm2, %v1786_v45 }
 0xaac   : > { %2833 = vmatprep.mubr.msk.bf16.mxu1 %vm3418_vm0, %v3417_v0 }
 0xb00   : > { %v1767_v38 = vpop.xlane.xlu1 %1766 }
 0xb01   : > { %3094 = vrcp.f32 %v1767_v38 }
 0xb04   : > { %v1770_v46 = vpop.xlane.xlu0 %1769 }
 0xb05   : > { %3096 = vrcp.f32 %v1770_v46 }
 0xb08   : > { %v1773_v47 = vpop.xlane.xlu1 %1772  ;;  %v1940_v51 = vpop.permute.xlu0 %1939 }
 0xb09   : > { %3098 = vrcp.f32 %v1773_v47  ;;  %v1945_v56 = vsel %vm1796_vm5, %v1940_v51, 0 }
 0xb0b   : > { %v3095_v48 = vpop.eup %3094 }
 0xb0c   : > { %v1779_v49 = vmul.f32 %v3095_v48, %v3087_v35  ;;  %v1891_v50 = vpop.permute.xlu1 %1890  ;;  %v3060_v35 = vld [vmem:[#allocation10] sm:$0xff]  }
 0xb0d   : > { %v1896_v52 = vsel %vm1796_vm5, %v1891_v50, 0 }
 0xb0e   : > { %2832 = vmatpush3.bf16.msra.mxu1 %v1896_v52  ;;  %v1787_v53 = vpack.c.bf16 %v1779_v49, %v1779_v49  ;;  %1783 = vst.msk [vmem:[%s4044_s21 + $0x8] sm:$0xff] %vm891_vm2, %v1779_v49 }
 0xb0f   : > { %v3097_v54 = vpop.eup %3096  ;;  %2843 = vmatprep.subr.bf16.mxu1 %v3417_v0 }
 0xb10   : > { %v1780_v55 = vmul.f32 %v3097_v54, %v3089_v37  ;;  %2828 = vmatmul.mubr.msk.bf16.vlgmr.msra.gmra.mrb[36].mxu0 %vm891_vm2, %v1787_v53 }
 0xb11   : > { %2838 = vmatpush3.bf16.msra.mxu0 %v1945_v56  ;;  %2839 = vmatprep.mubr.msk.bf16.mxu0 %vm3418_vm0, %v3417_v0 }
 0xb12   : > { %v1788_v57 = vpack.c.bf16 %v1780_v55, %v1780_v55  ;;  %2851 = vmatprep.subr.bf16.mxu0 %v3417_v0  ;;  %1784 = vst.msk [vmem:[%s4044_s21 + $0x10] sm:$0xff] %vm891_vm2, %v1780_v55 }
 0xb13   : > { %v3099_v58 = vpop.eup %3098 }
 0xb14   : > { %v1781_v59 = vmul.f32 %v3099_v58, %v3091_v40  ;;  %2834 = vmatmul.mubr.msk.bf16.vlgmr.msra.gmra.mrb[36].mxu1 %vm891_vm2, %v1788_v57 }
 0xb15   : > { %2847 = vmatprep.mubr.msk.bf16.mxu1 %vm3418_vm0, %v3417_v0  ;;  %2844 = vmatpush3.bf16.msra.mxu1 %v3058_v2 }
 0xb16   : > { %v1789_v60 = vpack.c.bf16 %v1781_v59, %v1781_v59  ;;  %1785 = vst.msk [vmem:[%s4044_s21 + $0x18] sm:$0xff] %vm891_vm2, %v1781_v59  ;;  %2845 = vmatprep.subr.bf16.mxu1 %v3417_v0 }
 0xb18   : > { %2840 = vmatmul.mubr.msk.bf16.vlgmr.msra.gmra.mrb[40].mxu0 %vm891_vm2, %v1789_v60 }
 0xb19   : > { %2855 = vmatprep.mubr.msk.bf16.mxu0 %vm3418_vm0, %v3417_v0  ;;  %2846 = vmatpush3.bf16.msra.mxu1 %v3059_v3 }
 0xb1a   : > { %2859 = vmatprep.subr.bf16.mxu1 %v3417_v0  ;;  %2852 = vmatpush3.bf16.msra.mxu0 %v3060_v35 }
 0xb1b   : > { %2853 = vmatprep.subr.bf16.mxu0 %v3417_v0 }
 0xb1e   : > { %2854 = vmatpush3.bf16.msra.mxu0 %v3061_v36 }
 0xb7e   : > { %v1834_v61 = vpop.f32.mrb[32].mxu1 }
 0xb7f   : > { %v2823_v62 = vpop.f32.mrb[33].mxu1 }
 0xb80   : > { %v1837_v63 = vpop.f32.mrb[34].mxu1 }
 0xb81   : > { %v2824_v1 = vpop.f32.mrb[35].mxu1 }
 0xbe3   : > { %v1883_v4 = vpop.f32.mrb[36].mxu0 }
 0xbe4   : > { %1988 = vrot.lane.b32.xlu1 %v1883_v4, %s3423_s6  ;;  %v2829_v6 = vpop.f32.mrb[37].mxu0 }
 0xbe5   : > { %v1886_v7 = vpop.f32.mrb[38].mxu0 }
 0xbe6   : > { %v2830_v8 = vpop.f32.mrb[39].mxu0 }
 0xbe7   : > { %v1932_v9 = vpop.f32.mrb[36].mxu1 }
 0xbe8   : > { %1992 = vrot.lane.b32.xlu0 %v1932_v9, %s3424_s30  ;;  %v2835_v10 = vpop.f32.mrb[37].mxu1  ;;  %s4316_s30 = sld [smem:[#allocation40_spill]] }
 0xbe9   : > { %v1935_v11 = vpop.f32.mrb[38].mxu1 }
 0xbea   : > { %v2836_v12 = vpop.f32.mrb[39].mxu1 }
 0xbeb   : > { %v1981_v13 = vpop.f32.mrb[40].mxu0 }
 0xbec   : > { %1996 = vrot.lane.b32.xlu1 %v1981_v13, %s4315_s14  ;;  %v2841_v14 = vpop.f32.mrb[41].mxu0  ;;  %s2643_s14 = sshll.u32 %s4108_s27, 7 }
 0xbed   : > { %v1984_v15 = vpop.f32.mrb[42].mxu0  ;;  %s4114_s8 = scalar_lea.hbm %s4317_s2, %s2643_s14 }
 0xbee   : > { %v2842_v16 = vpop.f32.mrb[43].mxu0  ;;  %v3063_v37 = vld [vmem:[%s4316_s30 + $0x8] sm:$0xff]   ;;  %v3064_v39 = vld [vmem:[%s4316_s30 + $0x10] sm:$0xff]   ;;  %v3065_v38 = vld [vmem:[%s4316_s30 + $0x18] sm:$0xff]  }
 0xc56   : > { %v1989_v17 = vpop.permute.xlu1 %1988 }
 0xc57   : > { %v1999_v18 = vsel %vm891_vm2, %v1834_v61, %v1989_v17 }
 0xc5a   : > { %v1993_v5 = vpop.permute.xlu0 %1992 }
 0xc5b   : > { %v2000_v19 = vsel %vm1076_vm3, %v1999_v18, %v1993_v5 }
 0xc5e   : > { %v1997_v20 = vpop.permute.xlu1 %1996 }
 0xc5f   : > { %v2001_v21 = vsel %vm1331_vm4, %v2000_v19, %v1997_v20 }
 0xc60   : > { %v2002_v22 = vpack.c.bf16 %v2001_v21, %v2001_v21 }
 0xc62   : > { %2848 = vmatmul.mubr.msk.bf16.vlgmr.msra.gmra.mrb[40].mxu1 %vm739_vm1, %v2002_v22 }
 0xc63   : > { %2867 = vmatprep.mubr.msk.bf16.mxu1 %vm3418_vm0, %v3417_v0 }
 0xd35   : > { %v2052_v23 = vpop.f32.mrb[40].mxu1 }
 0xd36   : > { %v2053_v25 = vadd.f32 %v2052_v23, %v3972_v27  ;;  %v2849_v26 = vpop.f32.mrb[41].mxu1  ;;  %v3062_v27 = vld [vmem:[%s4316_s30] sm:$0xff]  }
 0xd37   : > { %v2055_v28 = vpop.f32.mrb[42].mxu1  ;;  %2860 = vmatpush3.bf16.msra.mxu1 %v3062_v27 }
 0xd38   : > { %v2850_v24 = vpop.f32.mrb[43].mxu1  ;;  %v2058_v29 = vsel %vm739_vm1, %v2053_v25, 0.0  ;;  %2861 = vmatprep.subr.bf16.mxu1 %v3417_v0 }
 0xd39   : > { %2059 = vadd.xlane.f32.xlu0 %v2058_v29 }
 0xd3b   : > { %2862 = vmatpush3.bf16.msra.mxu1 %v3063_v37 }
 0xd3c   : > { %2863 = vmatprep.subr.bf16.mxu1 %v3417_v0 }
 0xd3f   : > { %2864 = vmatpush3.bf16.msra.mxu1 %v3064_v39 }
 0xd40   : > { %2865 = vmatprep.subr.bf16.mxu1 %v3417_v0 }
 0xd43   : > { %2866 = vmatpush3.bf16.msra.mxu1 %v3065_v38 }
 0xdc6   : > { %v2060_v30 = vpop.xlane.xlu0 %2059 }
 0xdc7   : > { %v2061_v31 = vmul.f32 0.03125, %v2060_v30 }
 0xdc9   : > { %v2062_v32 = vsub.f32 %v2053_v25, %v2061_v31 }
 0xdcb   : > { %v2063_v33 = vmul.f32 %v2062_v32, %v2062_v32 }
 0xdcd   : > { %v2064_v34 = vsel %vm739_vm1, %v2063_v33, 0.0 }
 0xdce   : > { %2065 = vadd.xlane.f32.xlu1 %v2064_v34 }
 0xe5b   : > { %v2066_v40 = vpop.xlane.xlu1 %2065 }
 0xe5c   : > { %v2067_v41 = vmul.f32 0.03125, %v2066_v40 }
 0xe5e   : > { %v2068_v42 = vadd.f32 1e-05, %v2067_v41 }
 0xe60   : > { %3100 = vrsqrt.f32 %v2068_v42 }
 0xe6a   : > { %v3101_v43 = vpop.eup %3100 }
 0xe6b   : > { %v2070_v44 = vmul.f32 %v3101_v43, %v2062_v32 }
 0xe6d   : > { %v2071_v45 = vpack.c.bf16 %v2070_v44, %v2070_v44 }
 0xe6f   : > { %2856 = vmatmul.mubr.msk.bf16.vlgmr.msra.gmra.mrb[44].mxu0 %vm739_vm1, %v2071_v45 }
 0xf42   : > { %v2125_v46 = vpop.f32.mrb[44].mxu0 }
 0xf43   : > { %v2131_v47 = vmax.f32 %v2125_v46, 0.0  ;;  %v2857_v48 = vpop.f32.mrb[45].mxu0 }
 0xf44   : > { %v2128_v49 = vpop.f32.mrb[46].mxu0 }
 0xf45   : > { %v2132_v0 = vpack.c.bf16 %v2131_v47, %v2131_v47  ;;  %v2858_v50 = vpop.f32.mrb[47].mxu0 }
 0xf47   : > { %2868 = vmatmul.mubr.msk.bf16.vlgmr.msra.gmra.mrb[44].mxu1 %vm2165_vm6, %v2132_v0 }
0x101a   : > { %v2203_v51 = vpop.f32.mrb[44].mxu1 }
0x101b   : > { %v2204_v52 = vadd.f32 %v2203_v51, %v2070_v44  ;;  %v2869_v53 = vpop.f32.mrb[45].mxu1 }
0x101c   : > { %v2206_v54 = vpop.f32.mrb[46].mxu1 }
0x101d   : > { %v2870_v55 = vpop.f32.mrb[47].mxu1  ;;  %v2209_v56 = vsel %vm739_vm1, %v2204_v52, 0.0 }
0x101e   : > { %2210 = vadd.xlane.f32.xlu0 %v2209_v56 }
0x10ab   : > { %v2211_v57 = vpop.xlane.xlu0 %2210 }
0x10ac   : > { %v2212_v58 = vmul.f32 0.03125, %v2211_v57 }
0x10ae   : > { %v2213_v59 = vsub.f32 %v2204_v52, %v2212_v58 }
0x10b0   : > { %v2214_v60 = vmul.f32 %v2213_v59, %v2213_v59 }
0x10b2   : > { %v2215_v61 = vsel %vm739_vm1, %v2214_v60, 0.0 }
0x10b3   : > { %2216 = vadd.xlane.f32.xlu0 %v2215_v61 }
0x10b4   : > { %3259 = shalt.err (!%p3256_p13)
}
0x10b5   : > { %s3260_s26 = scalar_lea.hbm %s4114_s8, 512  ;;  %s3264_s1 = scalar_lea.hbm %s4317_s2, 2048 }
0x10b6   : > { %p3261_p4 = scmp.ne.s32.totalorder %s4114_s8, %s3260_s26  ;;  %p3265_p1 = scmp.lt.u32.totalorder %s4114_s8, %s4317_s2 }
0x10b7   : > { %p3266_p2 = scmp.lt.u32.totalorder %s3264_s1, %s3260_s26  ;;  %p3268_p5 = scmp.lt.u32.totalorder %s3260_s26, %s4114_s8 }
0x10b8   : > { %p3262_p10 = pnand %p3261_p4, %p4318_p3 }
0x10b9   : > { %p3267_p6 = por %p3266_p2, %p3265_p1 }
0x10ba   : > { %p3263_p9 = pneg %p3262_p10 }
0x10bb   : > { %p3269_p11 = por %p3268_p5, %p3267_p6 }
0x10bd   : > { %p3270_p12 = pnand %p3269_p11, %p3263_p9 }
0x10bf   : > { %3273 = shalt.err (!%p3270_p12)
}
0x10c0   : > { %s3427_s15 = smov 128   ;;  %s3428_s5 = smov 256  }
0x10c1   : > { %2890 = dma.vmem_to_hbm [thread:$0]  (%p4318_p3), %s4105_s11, 512, %s4114_s8, %s2229_s24, %s3427_s15, %s3428_s5, %s3423_s6  }
0x10c2   : > { %s2583_s26 = sshll.u32 %s3913_s13, 3  ;;  %s2640_s14 = sshll.u32 %s4305_s7, 1 }
0x10c3   : > { %s2244_s9 = sadd.s32 %s4306_s16, %s2640_s14  ;;  %s673_s25 = scalar_lea.vmem [#allocation11], %s2583_s26 }
0x10c4   : > { %s2641_s1 = sshll.u32 %s2244_s9, 7  ;;  %s2248_s17 = sshll.u32 %s673_s25, 4  ;;  %s4149_s17 = int_to_ptr.vmem [resolvable:$true] %s2248_s17 }
0x10c5   : > { %s4319_s10 = sld [smem:[#allocation41_spill]]  ;;  %s2224_s6 = scalar_lea.sflag [#allocation4], %s3913_s13 }
0x10c6   : > { %s3274_s7 = scalar_lea.vmem %s4149_s17, 128  ;;  %s3429_s16 = smov [#allocation11]  }
0x10c7   : > { %p3275_p8 = scmp.ne.s32.totalorder %s4149_s17, %s3274_s7  ;;  %s3278_s11 = sshll.u32 %s3429_s16, 4  ;;  %s3279_s11 = int_to_ptr.vmem [resolvable:$false] %s3278_s11 }
0x10c8   : > { %s3280_s8 = scalar_lea.vmem %s3279_s11, 256  ;;  %p3281_p13 = scmp.lt.s32.totalorder %s4149_s17, %s3279_s11 }
0x10c9   : > { %p3276_p0 = pnand %p3275_p8, %p4318_p3  ;;  %p3282_p4 = scmp.lt.s32.totalorder %s3280_s8, %s3274_s7 }
0x10cb   : > { %s4147_s29 = scalar_lea.hbm %s4319_s10, %s2641_s1  ;;  %p3277_p7 = pneg %p3276_p0 }
0x10cc   : > { %p3283_p10 = por %p3282_p4, %p3281_p13 }
0x10ce   : > { %p3284_p9 = pnand %p3283_p10, %p3277_p7 }
0x1140   : > { %v2217_v62 = vpop.xlane.xlu0 %2216 }
0x1141   : > { %v2218_v63 = vmul.f32 0.03125, %v2217_v62 }
0x1143   : > { %v2219_v1 = vadd.f32 1e-05, %v2218_v63 }
0x1145   : > { %3102 = vrsqrt.f32 %v2219_v1 }
0x114f   : > { %v3103_v2 = vpop.eup %3102 }
0x1150   : > { %v2221_v3 = vmul.f32 %v3103_v2, %v2213_v59 }
0x1152   : > { %2222 = vst.msk [vmem:[%s673_s25] sm:$0xff] %vm739_vm1, %v2221_v3 }
0x1153   : > { %3287 = shalt.err (!%p3284_p9)
}
0x1154   : > { %s3288_s3 = scalar_lea.hbm %s4147_s29, 128  ;;  %s3292_s24 = scalar_lea.hbm %s4319_s10, 512 }
0x1155   : > { %p3289_p1 = scmp.ne.s32.totalorder %s4147_s29, %s3288_s3  ;;  %p3293_p5 = scmp.lt.u32.totalorder %s4147_s29, %s4319_s10 }
0x1156   : > { %p3294_p11 = scmp.lt.u32.totalorder %s3292_s24, %s3288_s3  ;;  %p3296_p8 = scmp.lt.u32.totalorder %s3288_s3, %s4147_s29 }
0x1157   : > { %p3290_p2 = pnand %p3289_p1, %p4318_p3 }
0x1158   : > { %p3295_p12 = por %p3294_p11, %p3293_p5 }
0x1159   : > { %p3291_p6 = pneg %p3290_p2 }
0x115a   : > { %p3297_p0 = por %p3296_p8, %p3295_p12 }
0x115c   : > { %p3298_p7 = pnand %p3297_p0, %p3291_p6 }
0x115e   : > { %3301 = shalt.err (!%p3298_p7)
}
0x115f   : > { %2889 = dma.vmem_to_hbm [thread:$0]  (%p4318_p3), %s4149_s17, 128, %s4147_s29, %s2224_s6   ;;  %v2309_v4 = vld [vmem:[%s4044_s21] sm:$0xff] (%p4318_p3)  ;;  %v2311_v6 = vld [vmem:[%s4044_s21 + $0x8] sm:$0xff] (%p4318_p3)  ;;  %v2313_v7 = vld [vmem:[%s4044_s21 + $0x10] sm:$0xff] (%p4318_p3) }
0x1160   : > { %2271 = sbr.rel (!%p4318_p3) target bundleno = 4458 (0x116a), region = 104  ;;  %s2645_s26 = sshll.u32 (%p4318_p3), %s4108_s27, 3  ;;  %v2315_v8 = vld [vmem:[%s4044_s21 + $0x18] sm:$0xff] (%p4318_p3) }
0x1161   : > { %s4320_s1 = sld [smem:[#allocation43_spill]] (%p4318_p3) }
0x1167   : > { %s2275_s25 = scalar_lea.vmem %s4320_s1, %s2645_s26 }
0x1168   : > { %2310 = vst [vmem:[%s2275_s25] sm:$0xff] %v2309_v4  ;;  %2312 = vst [vmem:[%s2275_s25 + $0x10] sm:$0xff] %v2311_v6 }
0x1169   : > { %2314 = vst [vmem:[%s2275_s25 + $0x20] sm:$0xff] %v2313_v7  ;;  %2316 = vst [vmem:[%s2275_s25 + $0x30] sm:$0xff] %v2315_v8 }
0x116a PF: > { %p2926_p3 = scmp.ge.s32.totalorder %s3408_s28, 2  ;;  %s2328_s4 = sand.u32 1, %s3368_s18  }
0x116b   : > { %p4321_p13 = scmp.ne.s32.totalorder %s4299_s12, 0  ;;  %s2329_s29 = scalar_lea.sflag [#allocation4], %s2328_s4 }
0x116d   : > { %p2911_p4 = pnand %p2926_p3, %p4321_p13 }
0x116f   : > { %3359 = dma.done.wait (!%p2911_p4), %s2329_s29, 128  }
0x1170   : > { %3361 = vsyncadd (!%p2911_p4), %s2329_s29, 4294967168  ;;  %s2338_s27 = scalar_lea.sflag [#allocation13], %s2328_s4 }
0x1171   : > { %3363 = dma.done.wait (!%p2911_p4), %s2338_s27, 512  }
0x1172   : > { %3365 = vsyncadd (!%p2911_p4), %s2338_s27, 4294966784  ;;  %s37_s28 = sadd.s32 1, %s3408_s28   ;;  %s4322_s17 = sld [smem:[#allocation27_spill]] }
0x1173   : > { %p34_p10 = scmp.ge.s32.totalorder %s37_s28, 6   ;;  %s4323_s24 = sld [smem:[#allocation22_spill]] }
0x1174   : > { %s4324_s25 = sld [smem:[#allocation23_spill]]  ;;  %s4325_s26 = sld [smem:[#allocation25_spill]] }
0x1175   : > { %s4326_s27 = sld [smem:[#allocation26_spill]]  ;;  %s4327_s18 = smov %s3372_s19 }
0x1176   : > { %s4328_s19 = smov %s3376_s20  ;;  %s4329_s20 = smov %s3742_s0 }
0x1177   : > { %s4330_s21 = smov %s3384_s22  ;;  %s4331_s22 = smov %s3388_s23 }
0x1178   : > { %s4332_s23 = smov %s4322_s17  ;;  %36 = sbr.rel (!%p34_p10) target bundleno = 30 (0x1e), region = 212 }
0x117f   :  { %2350 = vsyncpa [#allocation3], 1 }
0x1180   :  { %2352 = vsyncpa [#allocation3 + $0x1], 1 }
0x1181   :  { %2353 = vsyncpa [#allocation6], 1 }
0x1182   :  { %2354 = vsyncpa [#allocation9], 1 }
0x1183   :  { %2355 = vsyncpa [#allocation4], 1 }
0x1184   :  { %2357 = vsyncpa [#allocation4 + $0x1], 1 }
0x1185   :  { %2358 = vsyncpa [#allocation13], 1 }
0x1186   :  { %2360 = vsyncpa [#allocation13 + $0x1], 1 }

</bundles_post_ra>
